<compile_context>
chip_gen: v5e
topology: v5e:2x2
jax: 0.10.0
libtpu: 0.0.40
codegen_flags: <defaults>
</compile_context>

<pallas_src>
from functools import partial

import jax
import jax.numpy as jnp
from jax.experimental import pallas as pl
from jax.experimental.pallas import tpu as pltpu


def _linear_attention_kernel(x_ref, wqkv_ref, wout_ref, bout_ref, o_ref, *,
                             heads, dim_head, l_actual, compute_dtype):
    """Processes one (batch_block, C, Lp) tile of the NCL input per grid step.

    x_ref    : (Bb, C, Lp)       input, NCL layout (L on lanes, padded to 128k)
    wqkv_ref : (3*H*D, C)        to_qkv weight (Conv1d 1x1, no bias), cdt
    wout_ref : (C, H*D)          to_out weight, cdt
    bout_ref : (C, 1)            to_out bias (broadcast over L), f32
    o_ref    : (Bb, C, Lp)       result, NCL layout
    """
    bb, c, lp = x_ref.shape
    hidden = heads * dim_head
    g = bb * heads                       # heads folded into the matmul batch dim
    cdt = compute_dtype
    approx = jnp.dtype(cdt) != jnp.dtype(jnp.float32)

    x = x_ref[...].astype(cdt)                                        # (Bb, C, Lp)
    # Weights broadcast over the (small) batch dim so every contraction is a
    # canonical single-batch-dim batched matmul (tiny VMEM cost).
    wqkv = jnp.broadcast_to(wqkv_ref[...][None], (bb, 3 * hidden, c))  # (Bb, 3HD, C)
    wout = jnp.broadcast_to(wout_ref[...][None], (bb, c, hidden))      # (Bb, C, HD)
    bout = bout_ref[...]                                               # (C, 1) f32

    # Fused qkv projection for the whole batch block (f32 accumulation).
    qkv = jax.lax.dot_general(
        wqkv, x, (((2,), (1,)), ((0,), (0,))),
        preferred_element_type=jnp.float32)                            # (Bb, 3HD, Lp)

    # Channel layout is (qkv, heads, dim_head) outer->inner, matching
    # rearrange 'b (qkv heads c) l -> qkv b heads c l'.  Fold heads into the
    # leading (batch) dim of the subsequent batched matmuls:
    # (Bb, H*D, Lp) -> (Bb*H, D, Lp)  (sublane-aligned split, pure reshape).
    q = qkv[:, 0 * hidden:1 * hidden, :].reshape(g, dim_head, lp)
    k = qkv[:, 1 * hidden:2 * hidden, :].reshape(g, dim_head, lp)
    v = qkv[:, 2 * hidden:3 * hidden, :].reshape(g, dim_head, lp)

    # softmax(k, dim=-1) over the (padded) sequence axis, f32 statistics.
    # Padded lanes are masked out of the statistics (v/q there are exactly 0).
    if l_actual != lp:
        lane = jax.lax.broadcasted_iota(jnp.int32, (1, 1, lp), 2)
        k = jnp.where(lane < l_actual, k, -1e30)
    k_max = jnp.max(k, axis=-1, keepdims=True)                         # (G, D, 1)
    k_exp = jnp.exp(k - k_max)                                         # (G, D, Lp)
    k_sum = jnp.sum(k_exp, axis=-1, keepdims=True)                     # (G, D, 1)

    # Deferred softmax denominator: scale q along d (EUP reciprocal) instead of
    # dividing the (D, Lp) exp tensor, so k_exp feeds the MXU untouched.
    q = q * pl.reciprocal(k_sum, approx=approx)                        # (G, D, Lp)

    # context^T[g, e, d] = sum_l v[g, e, l] * exp_k[g, d, l]
    context_t = jax.lax.dot_general(
        v.astype(cdt), k_exp.astype(cdt),
        (((2,), (2,)), ((0,), (0,))),
        preferred_element_type=jnp.float32)                            # (G, E, D)

    # out[g, e, l] = sum_d context^T[g, e, d] * q_norm[g, d, l]
    out = jax.lax.dot_general(
        context_t.astype(cdt), q.astype(cdt),
        (((2,), (1,)), ((0,), (0,))),
        preferred_element_type=jnp.float32)                            # (G, E, Lp)

    # rearrange 'b heads c l -> b (heads c) l' (pure reshape, heads back into
    # the channel / sublane dim).
    out = out.reshape(bb, hidden, lp).astype(cdt)                      # (Bb, HD, Lp)

    # Output 1x1 conv with bias: K = H*D = 128 contraction on the MXU.
    y = jax.lax.dot_general(
        wout, out, (((2,), (1,)), ((0,), (0,))),
        preferred_element_type=jnp.float32)                            # (Bb, C, Lp)
    o_ref[...] = (y + bout).astype(o_ref.dtype)


def _pick_batch_block(b, c, lp, hidden, cdt_bytes, vmem_budget_bytes,
                      min_step_bytes=1 << 20):
    """Largest divisor of b whose per-step VMEM estimate fits the budget.

    Prefers an even number of grid steps (v7x shares the 'parallel' batch axis
    across two TensorCores) as long as each step still moves >= min_step_bytes
    of HBM traffic, so the ~0.35us/step pipeline overhead stays negligible.
    """
    def vmem_estimate(bb):
        io = 4 * bb * c * lp * 4                       # 2x double-buffered x + y blocks (f32)
        interm = bb * lp * (c * (4 + cdt_bytes)        # x cast + y
                            + hidden * (24 + 4 * cdt_bytes))  # qkv/k_exp/q/out + MXU casts
        weights = 2 * (3 * hidden * c + c * hidden) * cdt_bytes + 2 * c * 4
        return io + interm + weights

    divisors = [d for d in range(1, b + 1) if b % d == 0]
    fitting = [d for d in divisors if vmem_estimate(d) <= vmem_budget_bytes] or [1]
    best = max(fitting)
    for d in sorted(fitting, reverse=True):
        if (b // d) % 2 == 0 and 2 * d * c * lp * 4 >= min_step_bytes:
            return d
    return best


def linear_attention_forward(x_ncl, w_qkv, w_out, b_out, *, heads, dim_head,
                             compute_dtype=jnp.bfloat16, batch_block=None):
    """Pallas forward matching LinearAttention.forward.

    x_ncl : (B, C, L)          float32   (PyTorch Conv1d layout)
    w_qkv : (3*H*D, C, 1)      to_qkv.weight (bias=False)
    w_out : (C, H*D, 1)        to_out.weight
    b_out : (C,)               to_out.bias
    returns (B, C, L) float32
    """
    b, c, l = x_ncl.shape
    hidden = heads * dim_head
    assert w_qkv.shape == (3 * hidden, c, 1)
    assert w_out.shape == (c, hidden, 1)
    assert b_out.shape == (c,)

    cdt = jnp.dtype(compute_dtype)
    cdt_bytes = cdt.itemsize

    # 1x1 conv weights act as plain (out, in) matmuls in the NCL layout.
    # Pre-cast the weights to the MXU operand dtype once in the wrapper.
    x = x_ncl.astype(jnp.float32)
    wqkv = w_qkv[:, :, 0].astype(cdt)                 # (3*H*D, C)
    wout = w_out[:, :, 0].astype(cdt)                 # (C, H*D)
    bout = b_out.reshape(c, 1).astype(jnp.float32)    # (C, 1)

    # Lane-dense output stores: pad the sequence axis to a multiple of 128.
    lp = ((l + 127) // 128) * 128
    if lp != l:
        x = jnp.pad(x, ((0, 0), (0, 0), (0, lp - l)))

    # VMEM-aware block sizing (v7x: 64 MiB physical, v5e/v6e: 128 MiB).
    try:
        vmem_cap = pltpu.get_tpu_info().vmem_capacity_bytes
    except Exception:
        vmem_cap = 64 * 1024 * 1024
    vmem_limit = min(int(vmem_cap * 0.75), 112 * 1024 * 1024)
    if batch_block is None:
        batch_block = _pick_batch_block(b, c, lp, hidden, cdt_bytes,
                                        int(vmem_limit * 0.85))
    assert b % batch_block == 0
    grid = (b // batch_block,)
    # NOTE: for very long sequences a second 'arbitrary' grid axis over L with
    # online-softmax / context accumulation would bound the qkv/k_exp
    # intermediates; not needed at the VMEM-budgeted block sizes used here.

    # Advisory cost estimate for the XLA scheduler.
    flops = b * (2 * (3 * hidden) * c * lp            # qkv projection
                 + 2 * hidden * dim_head * lp         # context
                 + 2 * hidden * dim_head * lp         # out = context^T @ q
                 + 2 * c * hidden * lp)               # output projection
    transcendentals = b * hidden * lp                 # exp in k softmax
    bytes_accessed = (4 * 2 * b * c * lp
                      + cdt_bytes * (3 * hidden * c + c * hidden) + 4 * c)
    cost = pl.CostEstimate(flops=flops, transcendentals=transcendentals,
                           bytes_accessed=bytes_accessed)

    kernel = partial(_linear_attention_kernel, heads=heads, dim_head=dim_head,
                     l_actual=l, compute_dtype=cdt)

    y = pl.pallas_call(
        kernel,
        out_shape=jax.ShapeDtypeStruct((b, c, lp), jnp.float32),
        grid=grid,
        in_specs=[
            pl.BlockSpec((batch_block, c, lp), lambda i: (i, 0, 0)),   # x
            pl.BlockSpec((3 * hidden, c), lambda i: (0, 0)),           # w_qkv
            pl.BlockSpec((c, hidden), lambda i: (0, 0)),               # w_out
            pl.BlockSpec((c, 1), lambda i: (0, 0)),                    # b_out
        ],
        out_specs=pl.BlockSpec((batch_block, c, lp), lambda i: (i, 0, 0)),
        compiler_params=pltpu.CompilerParams(
            dimension_semantics=("parallel",),
            vmem_limit_bytes=vmem_limit),
        cost_estimate=cost,
    )(x, wqkv, wout, bout)

    if lp != l:
        y = y[:, :, :l]
    return y


def _reference_forward(x, w_qkv, w_out, b_out, *, heads, dim_head):
    """Pure-JAX reference mirroring the PyTorch LinearAttention.forward."""
    b, c, l = x.shape
    hidden = heads * dim_head
    qkv = jnp.einsum('oc,bcl->bol', w_qkv[:, :, 0], x)               # (B, 3*H*D, L)
    qkv = qkv.reshape(b, 3, heads, dim_head, l)
    q, k, v = qkv[:, 0], qkv[:, 1], qkv[:, 2]                        # (B, H, D, L)
    k = jax.nn.softmax(k, axis=-1)
    context = jnp.einsum('bhdn,bhen->bhde', k, v)                    # (B, H, D, D)
    out = jnp.einsum('bhde,bhdn->bhen', context, q)                  # (B, H, D, L)
    out = out.reshape(b, hidden, l)                                  # b (heads c) l
    y = jnp.einsum('oc,bcl->bol', w_out[:, :, 0], out) + b_out[None, :, None]
    return y


if __name__ == "__main__":
    # Module hyperparameters (defaults: heads=4, dim_head=32).
    dim = 32
    heads = 4
    dim_head = 32
    hidden = heads * dim_head

    # Small problem size (exercises the padded / masked sequence path).
    batch = 2
    seq = 16

    key = jax.random.PRNGKey(0)
    k_x, k_wqkv, k_wout, k_bout = jax.random.split(key, 4)

    x = jax.random.normal(k_x, (batch, dim, seq), dtype=jnp.float32)
    # Synthetic parameters with nn.Conv1d(kernel_size=1) shapes.
    w_qkv = 0.05 * jax.random.normal(k_wqkv, (3 * hidden, dim, 1), dtype=jnp.float32)
    w_out = 0.05 * jax.random.normal(k_wout, (dim, hidden, 1), dtype=jnp.float32)
    b_out = 0.05 * jax.random.normal(k_bout, (dim,), dtype=jnp.float32)

    y_ref = _reference_forward(x, w_qkv, w_out, b_out, heads=heads, dim_head=dim_head)

    # f32 MXU path (exact reciprocal): tight check against the JAX reference.
    y_f32 = linear_attention_forward(x, w_qkv, w_out, b_out, heads=heads,
                                     dim_head=dim_head,
                                     compute_dtype=jnp.float32)
    y_f32 = jax.block_until_ready(y_f32)
    assert y_f32.shape == (batch, dim, seq)
    assert jnp.allclose(y_f32, y_ref, atol=1e-3, rtol=1e-3), "f32 mismatch vs reference"

    # Default bf16-operand MXU path (f32 accumulate, approx rcp): looser tolerance.
    y_bf16 = linear_attention_forward(x, w_qkv, w_out, b_out, heads=heads,
                                      dim_head=dim_head)
    y_bf16 = jax.block_until_ready(y_bf16)
    assert y_bf16.shape == (batch, dim, seq)
    assert jnp.allclose(y_bf16, y_ref, atol=3e-2, rtol=3e-2), "bf16 mismatch vs reference"

    print("KERNEL_OK")
</pallas_src>

<mosaic_0001>
module attributes {stable_mosaic.version = 11 : i64} {
  func.func @_linear_attention_kernel(%arg0: i32, %arg1: memref<2x32x128xf32, #tpu.memory_space<vmem>>, %arg2: memref<384x32xf32, #tpu.memory_space<vmem>>, %arg3: memref<32x128xf32, #tpu.memory_space<vmem>>, %arg4: memref<32x1xf32, #tpu.memory_space<vmem>>, %arg5: memref<2x32x128xf32, #tpu.memory_space<vmem>>) attributes {dimension_semantics = [#tpu.dimension_semantics<parallel>], iteration_bounds = array<i64: 1>, scalar_prefetch = 0 : i64, scratch_operands = 0 : i64, tpu.core_type = #tpu.core_type<tc>, window_params = [{transform_indices = @transform_0, window_bounds = array<i64: 2, 32, 128>}, {pipeline_mode = #tpu.pipeline_mode<synchronous>, transform_indices = @transform_1, window_bounds = array<i64: 384, 32>}, {pipeline_mode = #tpu.pipeline_mode<synchronous>, transform_indices = @transform_2, window_bounds = array<i64: 32, 128>}, {pipeline_mode = #tpu.pipeline_mode<synchronous>, transform_indices = @transform_3, window_bounds = array<i64: 32, 1>}, {transform_indices = @transform_4, window_bounds = array<i64: 2, 32, 128>}]} {
    %c0 = arith.constant 0 : index
    %c0_0 = arith.constant 0 : index
    %c0_1 = arith.constant 0 : index
    %0 = vector.load %arg1[%c0, %c0_0, %c0_1] : memref<2x32x128xf32, #tpu.memory_space<vmem>>, vector<2x32x128xf32>
    %c0_2 = arith.constant 0 : index
    %c0_3 = arith.constant 0 : index
    %1 = vector.load %arg2[%c0_2, %c0_3] : memref<384x32xf32, #tpu.memory_space<vmem>>, vector<384x32xf32>
    %2 = vector.shape_cast %1 : vector<384x32xf32> to vector<1x384x32xf32>
    %3 = vector.shape_cast %2 : vector<1x384x32xf32> to vector<1x384x32xf32>
    %4 = vector.broadcast %3 : vector<1x384x32xf32> to vector<2x384x32xf32>
    %c0_4 = arith.constant 0 : index
    %c0_5 = arith.constant 0 : index
    %5 = vector.load %arg3[%c0_4, %c0_5] : memref<32x128xf32, #tpu.memory_space<vmem>>, vector<32x128xf32>
    %6 = vector.shape_cast %5 : vector<32x128xf32> to vector<1x32x128xf32>
    %7 = vector.shape_cast %6 : vector<1x32x128xf32> to vector<1x32x128xf32>
    %8 = vector.broadcast %7 : vector<1x32x128xf32> to vector<2x32x128xf32>
    %c0_6 = arith.constant 0 : index
    %c0_7 = arith.constant 0 : index
    %9 = vector.load %arg4[%c0_6, %c0_7] : memref<32x1xf32, #tpu.memory_space<vmem>>, vector<32x1xf32>
    %cst = arith.constant dense<0.000000e+00> : vector<2x384x128xf32>
    %10 = tpu.matmul %4, %0, %cst {dimension_numbers = #tpu.dot_dimension_numbers<[2], [1], [1], [2], [0, 0, 0, 1, 1, 2], [0], [0]>} : vector<2x384x32xf32>, vector<2x32x128xf32>, vector<2x384x128xf32> -> vector<2x384x128xf32>
    %11 = vector.extract_strided_slice %10 {offsets = [0, 0, 0], sizes = [2, 128, 128], strides = [1, 1, 1]} : vector<2x384x128xf32> to vector<2x128x128xf32>
    %12 = vector.shape_cast %11 : vector<2x128x128xf32> to vector<8x32x128xf32>
    %13 = vector.extract_strided_slice %10 {offsets = [0, 128, 0], sizes = [2, 128, 128], strides = [1, 1, 1]} : vector<2x384x128xf32> to vector<2x128x128xf32>
    %14 = vector.shape_cast %13 : vector<2x128x128xf32> to vector<8x32x128xf32>
    %15 = vector.extract_strided_slice %10 {offsets = [0, 256, 0], sizes = [2, 128, 128], strides = [1, 1, 1]} : vector<2x384x128xf32> to vector<2x128x128xf32>
    %16 = vector.shape_cast %15 : vector<2x128x128xf32> to vector<8x32x128xf32>
    %17 = tpu.iota {dimensions = array<i32: 2>} : vector<1x1x128xi32>
    %c16_i32 = arith.constant 16 : i32
    %18 = vector.broadcast %c16_i32 : i32 to vector<1x1x128xi32>
    %19 = arith.cmpi slt, %17, %18 : vector<1x1x128xi32>
    %cst_8 = arith.constant -1.000000e+30 : f32
    %20 = vector.shape_cast %19 : vector<1x1x128xi1> to vector<1x1x128xi1>
    %21 = vector.broadcast %20 : vector<1x1x128xi1> to vector<8x32x128xi1>
    %22 = vector.broadcast %cst_8 : f32 to vector<8x32x128xf32>
    %23 = arith.select %21, %14, %22 : vector<8x32x128xi1>, vector<8x32x128xf32>
    %cst_9 = arith.constant dense<0xFF800000> : vector<8x32xf32>
    %24 = vector.multi_reduction <maximumf>, %23, %cst_9 [2] : vector<8x32x128xf32> to vector<8x32xf32>
    %25 = vector.shape_cast %24 : vector<8x32xf32> to vector<8x32x1xf32>
    %26 = vector.broadcast %25 : vector<8x32x1xf32> to vector<8x32x128xf32>
    %27 = arith.subf %23, %26 : vector<8x32x128xf32>
    %28 = math.exp %27 : vector<8x32x128xf32>
    %cst_10 = arith.constant dense<0.000000e+00> : vector<8x32xf32>
    %29 = vector.multi_reduction <add>, %28, %cst_10 [2] : vector<8x32x128xf32> to vector<8x32xf32>
    %30 = vector.shape_cast %29 : vector<8x32xf32> to vector<8x32x1xf32>
    %31 = tpu.reciprocal %30 : vector<8x32x1xf32> -> vector<8x32x1xf32>
    %32 = vector.broadcast %31 : vector<8x32x1xf32> to vector<8x32x128xf32>
    %33 = arith.mulf %12, %32 : vector<8x32x128xf32>
    %cst_11 = arith.constant dense<0.000000e+00> : vector<8x32x32xf32>
    %34 = tpu.matmul %16, %28, %cst_11 {dimension_numbers = #tpu.dot_dimension_numbers<[2], [2], [1], [1], [0, 0, 0, 1, 1, 1], [0], [0]>} : vector<8x32x128xf32>, vector<8x32x128xf32>, vector<8x32x32xf32> -> vector<8x32x32xf32>
    %cst_12 = arith.constant dense<0.000000e+00> : vector<8x32x128xf32>
    %35 = tpu.matmul %34, %33, %cst_12 {dimension_numbers = #tpu.dot_dimension_numbers<[2], [1], [1], [2], [0, 0, 0, 1, 1, 2], [0], [0]>} : vector<8x32x32xf32>, vector<8x32x128xf32>, vector<8x32x128xf32> -> vector<8x32x128xf32>
    %36 = vector.shape_cast %35 : vector<8x32x128xf32> to vector<2x128x128xf32>
    %cst_13 = arith.constant dense<0.000000e+00> : vector<2x32x128xf32>
    %37 = tpu.matmul %8, %36, %cst_13 {dimension_numbers = #tpu.dot_dimension_numbers<[2], [1], [1], [2], [0, 0, 0, 1, 1, 2], [0], [0]>} : vector<2x32x128xf32>, vector<2x128x128xf32>, vector<2x32x128xf32> -> vector<2x32x128xf32>
    %38 = vector.shape_cast %9 : vector<32x1xf32> to vector<1x32x1xf32>
    %39 = vector.broadcast %38 : vector<1x32x1xf32> to vector<2x32x128xf32>
    %40 = arith.addf %37, %39 : vector<2x32x128xf32>
    %c0_14 = arith.constant 0 : index
    %c0_15 = arith.constant 0 : index
    %c0_16 = arith.constant 0 : index
    %41 = vector.load %arg5[%c0_14, %c0_15, %c0_16] : memref<2x32x128xf32, #tpu.memory_space<vmem>>, vector<2x32x128xf32>
    tpu.vector_store %arg5[%c0_14, %c0_15, %c0_16], %40 {strides = array<i32>} : memref<2x32x128xf32, #tpu.memory_space<vmem>>, vector<2x32x128xf32>,
    return
  }
  func.func @transform_0(%arg0: i32) -> (i32, i32, i32) {
    %c0_i32 = arith.constant 0 : i32
    %c0_i32_0 = arith.constant 0 : i32
    %c0_i32_1 = arith.constant 0 : i32
    return %arg0, %c0_i32, %c0_i32_0 : i32, i32, i32
  }
  func.func @transform_1(%arg0: i32) -> (i32, i32) {
    %c0_i32 = arith.constant 0 : i32
    %c0_i32_0 = arith.constant 0 : i32
    %c0_i32_1 = arith.constant 0 : i32
    return %c0_i32, %c0_i32_0 : i32, i32
  }
  func.func @transform_2(%arg0: i32) -> (i32, i32) {
    %c0_i32 = arith.constant 0 : i32
    %c0_i32_0 = arith.constant 0 : i32
    %c0_i32_1 = arith.constant 0 : i32
    return %c0_i32, %c0_i32_0 : i32, i32
  }
  func.func @transform_3(%arg0: i32) -> (i32, i32) {
    %c0_i32 = arith.constant 0 : i32
    %c0_i32_0 = arith.constant 0 : i32
    %c0_i32_1 = arith.constant 0 : i32
    return %c0_i32, %c0_i32_0 : i32, i32
  }
  func.func @transform_4(%arg0: i32) -> (i32, i32, i32) {
    %c0_i32 = arith.constant 0 : i32
    %c0_i32_0 = arith.constant 0 : i32
    %c0_i32_1 = arith.constant 0 : i32
    return %arg0, %c0_i32, %c0_i32_0 : i32, i32, i32
  }
}

</mosaic_0001>

<bundles_post_ra>
// kernel: tpu_custom_call.1
= control target key start
LH: loop header
LB: loop body
LE: loop exit
PB: predicated region body
PF: predicated region fallthrough
CT: control target
= control target key end

     0   :  { %s3659_s0 = inlined_call_operand.vmem [shape: f32[2,32,128], index: 0, kind: input, shape index: {}]   ;;  %s3660_s1 = inlined_call_operand.vmem [shape: f32[384,32], index: 1, kind: input, shape index: {}]   ;;  %s3661_s2 = inlined_call_operand.vmem [shape: f32[32,128], index: 2, kind: input, shape index: {}]   ;;  %s3662_s3 = inlined_call_operand.vmem [shape: f32[32,1], index: 3, kind: input, shape index: {}]   ;;  %s3663_s4 = inlined_call_operand.hbm [shape: f32[2,32,128], index: 4, kind: output, shape index: {}]  }
   0x1   :  { %v21_v0 = vld [vmem:[%s3659_s0 + $0x18] sm:$0xff]  ;;  %v20_v1 = vld [vmem:[%s3659_s0 + $0x10] sm:$0xff]  ;;  %v19_v2 = vld [vmem:[%s3659_s0 + $0x8] sm:$0xff] }
   0x2   :  { %239 = vmatpush.msra.mxu0 %v21_v0  ;;  %2082 = vmatpush.msra.mxu2 %v21_v0  ;;  %v25_v3 = vld [vmem:[%s3659_s0 + $0x38] sm:$0xff]  ;;  %v24_v4 = vld [vmem:[%s3659_s0 + $0x30] sm:$0xff]  ;;  %v18_v5 = vld [vmem:[%s3659_s0] sm:$0xff] }
   0x3   :  { %400 = vmatpush.msra.mxu1 %v25_v3  ;;  %v23_v6 = vld [vmem:[%s3659_s0 + $0x28] sm:$0xff]  ;;  %2086 = vmatpush.msra.mxu3 %v25_v3 }
   0x4   :  { %240 = vmatpush.msra.mxu0 %v20_v1  ;;  %2083 = vmatpush.msra.mxu2 %v20_v1 }
   0x5   :  { %9 = vsyncpa [#allocation3], 0  ;;  %v26_v7 = vld [vmem:[%s3660_s1] sm:$0xff]  ;;  %vm82_vm0 = vcmask 261120   ;;  %401 = vmatpush.msra.mxu1 %v24_v4  ;;  %2087 = vmatpush.msra.mxu3 %v24_v4  ;;  %v27_v9 = vld [vmem:[%s3660_s1 + $0x8] sm:$0xff]  ;;  %s1942_s9 = sshll.u32 %s3663_s4, 4  ;;  %s1943_s9 = int_to_ptr.hbm [resolvable:$true] %s1942_s9 }
   0x6   :  { %241 = vmatpush.msra.mxu0 %v19_v2  ;;  %v22_v8 = vld [vmem:[%s3659_s0 + $0x20] sm:$0xff]  ;;  %2084 = vmatpush.msra.mxu2 %v19_v2  ;;  %v28_v10 = vld [vmem:[%s3660_s1 + $0x10] sm:$0xff]  ;;  %v29_v11 = vld [vmem:[%s3660_s1 + $0x18] sm:$0xff]  ;;  %s2253_s10 = smov 128   ;;  %s2254_s11 = smov 8  }
   0x7   :  { %402 = vmatpush.msra.mxu1 %v23_v6  ;;  %2088 = vmatpush.msra.mxu3 %v23_v6  ;;  %v30_v12 = vld [vmem:[%s3660_s1 + $0x20] sm:$0xff]  ;;  %v31_v13 = vld [vmem:[%s3660_s1 + $0x28] sm:$0xff]  ;;  %v32_v14 = vld [vmem:[%s3660_s1 + $0x30] sm:$0xff] }
   0x8   :  { %242 = vmatpush.msra.mxu0 %v18_v5  ;;  %2085 = vmatpush.msra.mxu2 %v18_v5  ;;  %v33_v15 = vld [vmem:[%s3660_s1 + $0x38] sm:$0xff]  ;;  %v34_v16 = vld [vmem:[%s3660_s1 + $0x40] sm:$0xff]  ;;  %v35_v17 = vld [vmem:[%s3660_s1 + $0x48] sm:$0xff] }
   0x9   :  { %1954 = vmatmul.msk.f32.vlgmr.msra.gmra.mxu0 %vm82_vm0, %v26_v7  ;;  %403 = vmatpush.msra.mxu1 %v22_v8  ;;  %v36_v18 = vld [vmem:[%s3660_s1 + $0x50] sm:$0xff]  ;;  %v37_v19 = vld [vmem:[%s3660_s1 + $0x58] sm:$0xff]  ;;  %v38_v20 = vld [vmem:[%s3660_s1 + $0x60] sm:$0xff] }
   0xa   :  { %2002 = vmatmul.msk.f32.vlgmr.msra.gmra.mxu1 %vm82_vm0, %v26_v7  ;;  %2089 = vmatpush.msra.mxu3 %v22_v8  ;;  %v39_v21 = vld [vmem:[%s3660_s1 + $0x68] sm:$0xff]  ;;  %v40_v22 = vld [vmem:[%s3660_s1 + $0x70] sm:$0xff]  ;;  %v41_v23 = vld [vmem:[%s3660_s1 + $0x78] sm:$0xff] }
   0xb   :  { %v42_v25 = vld [vmem:[%s3660_s1 + $0x80] sm:$0xff]  ;;  %v43_v28 = vld [vmem:[%s3660_s1 + $0x88] sm:$0xff]  ;;  %v44_v31 = vld [vmem:[%s3660_s1 + $0x90] sm:$0xff] }
   0xc   :  { %v45_v34 = vld [vmem:[%s3660_s1 + $0x98] sm:$0xff]  ;;  %v46_v37 = vld [vmem:[%s3660_s1 + $0xa0] sm:$0xff]  ;;  %v47_v40 = vld [vmem:[%s3660_s1 + $0xa8] sm:$0xff] }
   0xd   :  { %v48_v43 = vld [vmem:[%s3660_s1 + $0xb0] sm:$0xff]  ;;  %v49_v46 = vld [vmem:[%s3660_s1 + $0xb8] sm:$0xff]  ;;  %v50_v49 = vld [vmem:[%s3660_s1 + $0xc0] sm:$0xff] }
   0xe   :  { %v51_v52 = vld [vmem:[%s3660_s1 + $0xc8] sm:$0xff]  ;;  %v52_v55 = vld [vmem:[%s3660_s1 + $0xd0] sm:$0xff]  ;;  %v53_v58 = vld [vmem:[%s3660_s1 + $0xd8] sm:$0xff] }
   0xf   :  { %v54_v61 = vld [vmem:[%s3660_s1 + $0xe0] sm:$0xff]  ;;  %v55_v0 = vld [vmem:[%s3660_s1 + $0xe8] sm:$0xff]  ;;  %v56_v3 = vld [vmem:[%s3660_s1 + $0xf0] sm:$0xff] }
  0x10   :  { %v57_v6 = vld [vmem:[%s3660_s1 + $0xf8] sm:$0xff] }
  0x11   :  { %1955 = vmatmul.msk.f32.gmra.mxu0 %vm82_vm0, %v27_v9 }
  0x12   :  { %2003 = vmatmul.msk.f32.gmra.mxu1 %vm82_vm0, %v27_v9 }
  0x19   :  { %1956 = vmatmul.msk.f32.gmra.mxu0 %vm82_vm0, %v28_v10 }
  0x1a   :  { %2004 = vmatmul.msk.f32.gmra.mxu1 %vm82_vm0, %v28_v10 }
  0x21   :  { %1957 = vmatmul.msk.f32.gmra.mxu0 %vm82_vm0, %v29_v11 }
  0x22   :  { %2005 = vmatmul.msk.f32.gmra.mxu1 %vm82_vm0, %v29_v11  ;;  %v549_v11 = vlaneseq }
  0x29   :  { %1958 = vmatmul.msk.f32.gmra.mxu0 %vm82_vm0, %v30_v12 }
  0x2a   :  { %2006 = vmatmul.msk.f32.gmra.mxu1 %vm82_vm0, %v30_v12 }
  0x31   :  { %1959 = vmatmul.msk.f32.gmra.mxu0 %vm82_vm0, %v31_v13 }
  0x32   :  { %2007 = vmatmul.msk.f32.gmra.mxu1 %vm82_vm0, %v31_v13  ;;  %v2532_v13 = vand.u32 127, %v549_v11 }
  0x34   :  { %vm551_vm1 = vcmp.lt.s32.totalorder %v2532_v13, 16 }
  0x39   :  { %1960 = vmatmul.msk.f32.gmra.mxu0 %vm82_vm0, %v32_v14 }
  0x3a   :  { %2008 = vmatmul.msk.f32.gmra.mxu1 %vm82_vm0, %v32_v14 }
  0x41   :  { %1961 = vmatmul.msk.f32.gmra.mxu0 %vm82_vm0, %v33_v15 }
  0x42   :  { %2009 = vmatmul.msk.f32.gmra.mxu1 %vm82_vm0, %v33_v15 }
  0x49   :  { %1962 = vmatmul.msk.f32.gmra.mxu0 %vm82_vm0, %v34_v16 }
  0x4a   :  { %2010 = vmatmul.msk.f32.gmra.mxu1 %vm82_vm0, %v34_v16 }
  0x51   :  { %1963 = vmatmul.msk.f32.gmra.mxu0 %vm82_vm0, %v35_v17 }
  0x52   :  { %2011 = vmatmul.msk.f32.gmra.mxu1 %vm82_vm0, %v35_v17 }
  0x59   :  { %1964 = vmatmul.msk.f32.gmra.mxu0 %vm82_vm0, %v36_v18 }
  0x5a   :  { %2012 = vmatmul.msk.f32.gmra.mxu1 %vm82_vm0, %v36_v18 }
  0x61   :  { %1965 = vmatmul.msk.f32.gmra.mxu0 %vm82_vm0, %v37_v19 }
  0x62   :  { %2013 = vmatmul.msk.f32.gmra.mxu1 %vm82_vm0, %v37_v19 }
  0x69   :  { %1966 = vmatmul.msk.f32.gmra.mxu0 %vm82_vm0, %v38_v20 }
  0x6a   :  { %2014 = vmatmul.msk.f32.gmra.mxu1 %vm82_vm0, %v38_v20 }
  0x71   :  { %1967 = vmatmul.msk.f32.gmra.mxu0 %vm82_vm0, %v39_v21 }
  0x72   :  { %2015 = vmatmul.msk.f32.gmra.mxu1 %vm82_vm0, %v39_v21 }
  0x79   :  { %1968 = vmatmul.msk.f32.gmra.mxu0 %vm82_vm0, %v40_v22 }
  0x7a   :  { %2016 = vmatmul.msk.f32.gmra.mxu1 %vm82_vm0, %v40_v22 }
  0x81   :  { %1969 = vmatmul.msk.f32.gmra.mxu0 %vm82_vm0, %v41_v23 }
  0x82   :  { %2017 = vmatmul.msk.f32.gmra.mxu1 %vm82_vm0, %v41_v23 }
  0x86   :  { %v2384_v24 = vpop.f32.mrf.mxu0 }
  0x87   :  { %v2389_v26 = vpop.f32.mrf.mxu1 }
  0x88   :  { %3664 = vst [vmem:[#allocation5_spill] sm:$0xff] %v2389_v26 }
  0x89   :  { %1970 = vmatmul.msk.f32.gmra.mxu0 %vm82_vm0, %v42_v25 }
  0x8a   :  { %2018 = vmatmul.msk.f32.gmra.mxu1 %vm82_vm0, %v42_v25  ;;  %v58_v25 = vld [vmem:[%s3660_s1 + $0x100] sm:$0xff] }
  0x8e   :  { %v2393_v27 = vpop.f32.mrf.mxu0 }
  0x8f   :  { %v2398_v29 = vpop.f32.mrf.mxu1 }
  0x90   :  { %3665 = vst [vmem:[#allocation6_spill] sm:$0xff] %v2398_v29 }
  0x91   :  { %1971 = vmatmul.msk.f32.gmra.mxu0 %vm82_vm0, %v43_v28 }
  0x92   :  { %2019 = vmatmul.msk.f32.gmra.mxu1 %vm82_vm0, %v43_v28 }
  0x96   :  { %v2402_v30 = vpop.f32.mrf.mxu0 }
  0x97   :  { %v2407_v32 = vpop.f32.mrf.mxu1 }
  0x98   :  { %3666 = vst [vmem:[#allocation7_spill] sm:$0xff] %v2407_v32 }
  0x99   :  { %1972 = vmatmul.msk.f32.gmra.mxu0 %vm82_vm0, %v44_v31 }
  0x9a   :  { %2020 = vmatmul.msk.f32.gmra.mxu1 %vm82_vm0, %v44_v31 }
  0x9e   :  { %v2411_v33 = vpop.f32.mrf.mxu0 }
  0x9f   :  { %v2416_v35 = vpop.f32.mrf.mxu1 }
  0xa0   :  { %3667 = vst [vmem:[#allocation8_spill] sm:$0xff] %v2416_v35 }
  0xa1   :  { %1973 = vmatmul.msk.f32.gmra.mxu0 %vm82_vm0, %v45_v34 }
  0xa2   :  { %2021 = vmatmul.msk.f32.gmra.mxu1 %vm82_vm0, %v45_v34 }
  0xa6   :  { %v2420_v36 = vpop.f32.mrf.mxu0 }
  0xa7   :  { %v2425_v38 = vpop.f32.mrf.mxu1 }
  0xa8   :  { %3668 = vst [vmem:[#allocation9_spill] sm:$0xff] %v2425_v38 }
  0xa9   :  { %1974 = vmatmul.msk.f32.gmra.mxu0 %vm82_vm0, %v46_v37 }
  0xaa   :  { %2022 = vmatmul.msk.f32.gmra.mxu1 %vm82_vm0, %v46_v37  ;;  %v59_v37 = vld [vmem:[%s3660_s1 + $0x108] sm:$0xff] }
  0xae   :  { %v2429_v39 = vpop.f32.mrf.mxu0 }
  0xaf   :  { %v2434_v41 = vpop.f32.mrf.mxu1 }
  0xb0   :  { %3669 = vst [vmem:[#allocation10_spill] sm:$0xff] %v2434_v41 }
  0xb1   :  { %1975 = vmatmul.msk.f32.gmra.mxu0 %vm82_vm0, %v47_v40 }
  0xb2   :  { %2023 = vmatmul.msk.f32.gmra.mxu1 %vm82_vm0, %v47_v40 }
  0xb6   :  { %v2438_v42 = vpop.f32.mrf.mxu0 }
  0xb7   :  { %v2443_v44 = vpop.f32.mrf.mxu1 }
  0xb9   :  { %1976 = vmatmul.msk.f32.gmra.mxu0 %vm82_vm0, %v48_v43 }
  0xba   :  { %2024 = vmatmul.msk.f32.gmra.mxu1 %vm82_vm0, %v48_v43 }
  0xbe   :  { %v2447_v45 = vpop.f32.mrf.mxu0 }
  0xbf   :  { %v2452_v47 = vpop.f32.mrf.mxu1 }
  0xc1   :  { %1977 = vmatmul.msk.f32.gmra.mxu0 %vm82_vm0, %v49_v46 }
  0xc2   :  { %2025 = vmatmul.msk.f32.gmra.mxu1 %vm82_vm0, %v49_v46 }
  0xc6   :  { %v2456_v48 = vpop.f32.mrf.mxu0 }
  0xc7   :  { %v2461_v50 = vpop.f32.mrf.mxu1 }
  0xc8   :  { %3670 = vst [vmem:[#allocation11_spill] sm:$0xff] %v2461_v50 }
  0xc9   :  { %1978 = vmatmul.msk.f32.gmra.mxu0 %vm82_vm0, %v50_v49 }
  0xca   :  { %2026 = vmatmul.msk.f32.gmra.mxu1 %vm82_vm0, %v50_v49  ;;  %v60_v49 = vld [vmem:[%s3660_s1 + $0x110] sm:$0xff] }
  0xce   :  { %v2465_v51 = vpop.f32.mrf.mxu0 }
  0xcf   :  { %v2470_v53 = vpop.f32.mrf.mxu1 }
  0xd0   :  { %3671 = vst [vmem:[#allocation12_spill] sm:$0xff] %v2470_v53 }
  0xd1   :  { %1979 = vmatmul.msk.f32.gmra.mxu0 %vm82_vm0, %v51_v52 }
  0xd2   :  { %2027 = vmatmul.msk.f32.gmra.mxu1 %vm82_vm0, %v51_v52 }
  0xd6   :  { %v2474_v54 = vpop.f32.mrf.mxu0 }
  0xd7   :  { %v2479_v56 = vpop.f32.mrf.mxu1 }
  0xd8   :  { %3672 = vst [vmem:[#allocation13_spill] sm:$0xff] %v2479_v56 }
  0xd9   :  { %1980 = vmatmul.msk.f32.gmra.mxu0 %vm82_vm0, %v52_v55 }
  0xda   :  { %2028 = vmatmul.msk.f32.gmra.mxu1 %vm82_vm0, %v52_v55 }
  0xde   :  { %v2483_v57 = vpop.f32.mrf.mxu0 }
  0xdf   :  { %v2488_v59 = vpop.f32.mrf.mxu1 }
  0xe0   :  { %3673 = vst [vmem:[#allocation14_spill] sm:$0xff] %v2488_v59 }
  0xe1   :  { %1981 = vmatmul.msk.f32.gmra.mxu0 %vm82_vm0, %v53_v58 }
  0xe2   :  { %2029 = vmatmul.msk.f32.gmra.mxu1 %vm82_vm0, %v53_v58 }
  0xe6   :  { %v2492_v60 = vpop.f32.mrf.mxu0 }
  0xe7   :  { %v2497_v62 = vpop.f32.mrf.mxu1 }
  0xe8   :  { %3674 = vst [vmem:[#allocation15_spill] sm:$0xff] %v2497_v62  ;;  %v66_v62 = vld [vmem:[%s3660_s1 + $0x140] sm:$0xff] }
  0xe9   :  { %1982 = vmatmul.msk.f32.gmra.mxu0 %vm82_vm0, %v54_v61 }
  0xea   :  { %2030 = vmatmul.msk.f32.gmra.mxu1 %vm82_vm0, %v54_v61  ;;  %v61_v61 = vld [vmem:[%s3660_s1 + $0x118] sm:$0xff] }
  0xee   :  { %v2501_v63 = vpop.f32.mrf.mxu0 }
  0xef   :  { %v2506_v1 = vpop.f32.mrf.mxu1 }
  0xf0   :  { %3675 = vst [vmem:[#allocation16_spill] sm:$0xff] %v2506_v1 }
  0xf1   :  { %1983 = vmatmul.msk.f32.gmra.mxu0 %vm82_vm0, %v55_v0 }
  0xf2   :  { %2031 = vmatmul.msk.f32.gmra.mxu1 %vm82_vm0, %v55_v0 }
  0xf6   :  { %v2510_v2 = vpop.f32.mrf.mxu0 }
  0xf7   :  { %v2515_v4 = vpop.f32.mrf.mxu1 }
  0xf8   :  { %3676 = vst [vmem:[#allocation17_spill] sm:$0xff] %v2515_v4 }
  0xf9   :  { %1984 = vmatmul.msk.f32.gmra.mxu0 %vm82_vm0, %v56_v3 }
  0xfa   :  { %2032 = vmatmul.msk.f32.gmra.mxu1 %vm82_vm0, %v56_v3 }
  0xfe   :  { %v2519_v5 = vpop.f32.mrf.mxu0 }
  0xff   :  { %v2524_v7 = vpop.f32.mrf.mxu1 }
 0x100   :  { %3677 = vst [vmem:[#allocation18_spill] sm:$0xff] %v2524_v7 }
 0x101   :  { %1985 = vmatmul.msk.f32.gmra.mxu0 %vm82_vm0, %v57_v6 }
 0x102   :  { %2033 = vmatmul.msk.f32.gmra.mxu1 %vm82_vm0, %v57_v6 }
 0x106   :  { %v292_v8 = vpop.f32.mrf.mxu0 }
 0x107   :  { %v2528_v9 = vpop.f32.mrf.mxu1  ;;  %v2571_v40 = vsel %vm551_vm1, %v292_v8, -1e+30  ;;  %v62_v8 = vld [vmem:[%s3660_s1 + $0x120] sm:$0xff] }
 0x109   :  { %1986 = vmatmul.msk.f32.gmra.mxu0 %vm82_vm0, %v58_v25 }
 0x10a   :  { %2034 = vmatmul.msk.f32.gmra.mxu1 %vm82_vm0, %v58_v25  ;;  %v64_v25 = vld [vmem:[%s3660_s1 + $0x130] sm:$0xff] }
 0x10e   :  { %v295_v10 = vpop.f32.mrf.mxu0 }
 0x10f   :  { %v2530_v12 = vpop.f32.mrf.mxu1  ;;  %v2609_v11 = vsel %vm551_vm1, %v295_v10, -1e+30 }
 0x110   :  { %v2690_v59 = vsel %vm551_vm1, %v2530_v12, -1e+30  ;;  %v73_v12 = vld [vmem:[%s3660_s1 + $0x178] sm:$0xff] }
 0x111   :  { %1987 = vmatmul.msk.f32.gmra.mxu0 %vm82_vm0, %v59_v37 }
 0x112   :  { %2035 = vmatmul.msk.f32.gmra.mxu1 %vm82_vm0, %v59_v37  ;;  %v69_v37 = vld [vmem:[%s3660_s1 + $0x158] sm:$0xff] }
 0x113   :  { %1997 = vmatmul.msk.f32.vlgmr.msra.gmra.mxu2 %vm82_vm0, %v69_v37 }
 0x116   :  { %v298_v14 = vpop.f32.mrf.mxu0 }
 0x117   :  { %v2537_v15 = vsel %vm551_vm1, %v298_v14, -1e+30  ;;  %v2540_v16 = vpop.f32.mrf.mxu1 }
 0x118   :  { %590 = vmax.xlane.f32.xlu2 %v2537_v15 }
 0x119   :  { %1988 = vmatmul.msk.f32.gmra.mxu0 %vm82_vm0, %v60_v49 }
 0x11a   :  { %2036 = vmatmul.msk.f32.gmra.mxu1 %vm82_vm0, %v60_v49  ;;  %v65_v49 = vld [vmem:[%s3660_s1 + $0x138] sm:$0xff] }
 0x11e   :  { %v301_v17 = vpop.f32.mrf.mxu0 }
 0x11f   :  { %v2544_v18 = vsel %vm551_vm1, %v301_v17, -1e+30  ;;  %v2547_v19 = vpop.f32.mrf.mxu1 }
 0x120   :  { %592 = vmax.xlane.f32.xlu1 %v2544_v18 }
 0x121   :  { %1989 = vmatmul.msk.f32.gmra.mxu0 %vm82_vm0, %v61_v61 }
 0x122   :  { %2037 = vmatmul.msk.f32.gmra.mxu1 %vm82_vm0, %v61_v61 }
 0x126   :  { %v304_v20 = vpop.f32.mrf.mxu0 }
 0x127   :  { %v2551_v21 = vsel %vm551_vm1, %v304_v20, -1e+30  ;;  %v2554_v22 = vpop.f32.mrf.mxu1  ;;  %v63_v20 = vld [vmem:[%s3660_s1 + $0x128] sm:$0xff] }
 0x128   :  { %594 = vmax.xlane.f32.xlu2 %v2551_v21 }
 0x129   :  { %1990 = vmatmul.msk.f32.gmra.mxu0 %vm82_vm0, %v62_v8 }
 0x12a   :  { %2038 = vmatmul.msk.f32.gmra.mxu1 %vm82_vm0, %v62_v8 }
 0x12e   :  { %v307_v23 = vpop.f32.mrf.mxu0 }
 0x12f   :  { %v2561_v28 = vsel %vm551_vm1, %v307_v23, -1e+30  ;;  %v468_v31 = vpop.f32.mrf.mxu1 }
 0x130   :  { %596 = vmax.xlane.f32.xlu1 %v2561_v28  ;;  %v2667_v53 = vsel %vm551_vm1, %v468_v31, -1e+30  ;;  %v2682_v31 = vld [vmem:[%s3660_s1 + $0x170] sm:$0xff] }
 0x131   :  { %1991 = vmatmul.msk.f32.gmra.mxu0 %vm82_vm0, %v63_v20 }
 0x132   :  { %2039 = vmatmul.msk.f32.gmra.mxu1 %vm82_vm0, %v63_v20  ;;  %v70_v20 = vld [vmem:[%s3660_s1 + $0x160] sm:$0xff] }
 0x133   :  { %1998 = vmatmul.msk.f32.gmra.mxu2 %vm82_vm0, %v70_v20 }
 0x136   :  { %v310_v34 = vpop.f32.mrf.mxu0 }
 0x137   :  { %v2576_v43 = vpop.f32.mrf.mxu1  ;;  %v2595_v0 = vsel %vm551_vm1, %v310_v34, -1e+30 }
 0x138   :  { %586 = vmax.xlane.f32.xlu1 %v2571_v40 }
 0x139   :  { %1992 = vmatmul.msk.f32.gmra.mxu0 %vm82_vm0, %v64_v25 }
 0x13a   :  { %2040 = vmatmul.msk.f32.gmra.mxu1 %vm82_vm0, %v64_v25 }
 0x13e   :  { %v313_v46 = vpop.f32.mrf.mxu0 }
 0x13f   :  { %v2583_v52 = vsel %vm551_vm1, %v313_v46, -1e+30  ;;  %v474_v55 = vpop.f32.mrf.mxu1 }
 0x140   :  { %600 = vmax.xlane.f32.xlu0 %v2583_v52 }
 0x141   :  { %1993 = vmatmul.msk.f32.gmra.mxu0 %vm82_vm0, %v65_v49 }
 0x142   :  { %2041 = vmatmul.msk.f32.gmra.mxu1 %vm82_vm0, %v65_v49  ;;  %v2661_v49 = vld [vmem:[%s3660_s1 + $0x168] sm:$0xff] }
 0x143   :  { %1999 = vmatmul.msk.f32.gmra.mxu2 %vm82_vm0, %v2661_v49 }
 0x146   :  { %v2588_v58 = vpop.f32.mrf.mxu0 }
 0x147   :  { %v2600_v3 = vpop.f32.mrf.mxu1  ;;  %v2719_v26 = vsel %vm551_vm1, %v2588_v58, -1e+30 }
 0x148   :  { %598 = vmax.xlane.f32.xlu0 %v2595_v0  ;;  %v2756_v38 = vsel %vm551_vm1, %v2600_v3, -1e+30 }
 0x149   :  { %1994 = vmatmul.msk.f32.gmra.mxu0 %vm82_vm0, %v66_v62 }
 0x14a   :  { %2042 = vmatmul.msk.f32.gmra.mxu1 %vm82_vm0, %v66_v62  ;;  %v67_v62 = vld [vmem:[%s3660_s1 + $0x148] sm:$0xff] }
 0x14b   :  { %2000 = vmatmul.msk.f32.gmra.mxu2 %vm82_vm0, %v2682_v31 }
 0x14e   :  { %v2602_v6 = vpop.f32.mrf.mxu0 }
 0x14f   :  { %v2614_v14 = vpop.f32.mrf.mxu1 }
 0x150   :  { %588 = vmax.xlane.f32.xlu0 %v2609_v11 }
 0x151   :  { %1995 = vmatmul.msk.f32.gmra.mxu0 %vm82_vm0, %v67_v62 }
 0x152   :  { %2043 = vmatmul.msk.f32.gmra.mxu1 %vm82_vm0, %v67_v62  ;;  %v68_v62 = vld [vmem:[%s3660_s1 + $0x150] sm:$0xff] }
 0x153   :  { %2001 = vmatmul.msk.f32.gmra.mxu2 %vm82_vm0, %v73_v12  ;;  %2044 = vmatmul.msk.f32.vlgmr.msra.gmra.mxu3 %vm82_vm0, %v68_v62 }
 0x156   :  { %v322_v17 = vpop.f32.mrf.mxu0 }
 0x157   :  { %v483_v23 = vpop.f32.mrf.mxu1  ;;  %v2694_v1 = vsel %vm551_vm1, %v322_v17, -1e+30 }
 0x158   :  { %v2735_v58 = vsel %vm551_vm1, %v483_v23, -1e+30 }
 0x159   :  { %1996 = vmatmul.msk.f32.gmra.mxu0 %vm82_vm0, %v68_v62 }
 0x15b   :  { %2045 = vmatmul.msk.f32.gmra.mxu3 %vm82_vm0, %v69_v37 }
 0x15e   :  { %v325_v10 = vpop.f32.mrf.mxu0 }
 0x15f   :  { %v2626_v34 = vsel %vm551_vm1, %v325_v10, -1e+30  ;;  %v2635_v46 = vpop.f32.mrf.mxu1  ;;  %v2653_v10 = vsel %vm551_vm1, %v474_v55, -1e+30 }
 0x160   :  { %608 = vmax.xlane.f32.xlu1 %v2626_v34 }
 0x163   :  { %2046 = vmatmul.msk.f32.gmra.mxu3 %vm82_vm0, %v70_v20 }
 0x166   :  { %v328_v61 = vpop.f32.mrf.mxu0 }
 0x167   :  { %v2642_v8 = vsel %vm551_vm1, %v328_v61, -1e+30  ;;  %v2655_v50 = vpop.f32.mrf.mxu1 }
 0x168   :  { %610 = vmax.xlane.f32.xlu1 %v2642_v8 }
 0x16b   :  { %2047 = vmatmul.msk.f32.gmra.mxu3 %vm82_vm0, %v2661_v49 }
 0x16e   :  { %v331_v25 = vpop.f32.mrf.mxu0 }
 0x16f   :  { %v492_v56 = vpop.f32.mrf.mxu1  ;;  %v2725_v29 = vsel %vm551_vm1, %v331_v25, -1e+30  ;;  %v2747_v25 = vsel %vm551_vm1, %v2602_v6, -1e+30  ;;  %v2761_v6 = vsel %vm551_vm1, %v2554_v22, -1e+30 }
 0x170   :  { %632 = vmax.xlane.f32.xlu1 %v2653_v10  ;;  %v2783_v22 = vsel %vm551_vm1, %v2540_v16, -1e+30  ;;  %v2791_v37 = vsel %vm551_vm1, %v492_v56, -1e+30  ;;  %v2797_v16 = vsel %vm551_vm1, %v2528_v9, -1e+30 }
 0x171   :  { %v2805_v56 = vsel %vm551_vm1, %v2614_v14, -1e+30  ;;  %v2811_v9 = vsel %vm551_vm1, %v2635_v46, -1e+30  ;;  %v2819_v14 = vsel %vm551_vm1, %v2655_v50, -1e+30 }
 0x173   :  { %2048 = vmatmul.msk.f32.gmra.mxu3 %vm82_vm0, %v2682_v31 }
 0x176   :  { %v334_v61 = vpop.f32.mrf.mxu0 }
 0x177   :  { %v2671_v55 = vsel %vm551_vm1, %v334_v61, -1e+30  ;;  %v495_v17 = vpop.f32.mrf.mxu1 }
 0x178   :  { %628 = vmax.xlane.f32.xlu1 %v2667_v53  ;;  %614 = vmax.xlane.f32.xlu0 %v2671_v55 }
 0x17b   :  { %2049 = vmatmul.msk.f32.gmra.mxu3 %vm82_vm0, %v73_v12 }
 0x17e   :  { %v337_v61 = vpop.f32.mrf.mxu0 }
 0x17f   :  { %v2698_v4 = vsel %vm551_vm1, %v337_v61, -1e+30  ;;  %v2714_v61 = vsel %vm551_vm1, %v495_v17, -1e+30  ;;  %v2740_v17 = vsel %vm551_vm1, %v2547_v19, -1e+30 }
 0x180   :  { %620 = vmax.xlane.f32.xlu1 %v2690_v59  ;;  %606 = vmax.xlane.f32.xlu0 %v2694_v1 }
 0x181   :  { %616 = vmax.xlane.f32.xlu2 %v2698_v4 }
 0x186   :  { %v340_v49 = vpop.f32.mrf.mxu0 }
 0x188   :  { %646 = vmax.xlane.f32.xlu1 %v2714_v61  ;;  %602 = vmax.xlane.f32.xlu0 %v2719_v26 }
 0x189   :  { %612 = vmax.xlane.f32.xlu2 %v2725_v29 }
 0x18b   :  { %v591_v7 = vpop.xlane.xlu2 %590 }
 0x18c   :  { %v652_v62 = vsub.f32 %v2537_v15, %v591_v7  ;;  %v2768_v7 = vsel %vm551_vm1, %v2576_v43, -1e+30  ;;  %v498_v15 = vpop.f32.mrf.mxu1 }
 0x18e   :  { %v686_v35 = vmul.f32 1.442695, %v652_v62 }
 0x190   :  { %638 = vmax.xlane.f32.xlu1 %v2735_v58  ;;  %624 = vmax.xlane.f32.xlu0 %v2740_v17 }
 0x191   :  { %604 = vmax.xlane.f32.xlu2 %v2747_v25 }
 0x193   :  { %v593_v23 = vpop.xlane.xlu1 %592 }
 0x194   :  { %v653_v19 = vsub.f32 %v2544_v18, %v593_v23  ;;  %v2774_v18 = vsel %vm551_vm1, %v498_v15, -1e+30 }
 0x196   :  { %v688_v32 = vmul.f32 1.442695, %v653_v19  ;;  %v343_v19 = vpop.f32.mrf.mxu0 }
 0x198   :  { %2097 = vpow2.f32 %v688_v32  ;;  %634 = vmax.xlane.f32.xlu1 %v2756_v38  ;;  %626 = vmax.xlane.f32.xlu0 %v2761_v6 }
 0x199   :  { %630 = vmax.xlane.f32.xlu2 %v2768_v7  ;;  %2099 = vpow2.f32 %v686_v35 }
 0x19b   :  { %v595_v15 = vpop.xlane.xlu2 %594 }
 0x19c   :  { %v654_v46 = vsub.f32 %v2551_v21, %v595_v15 }
 0x19e   :  { %v2776_v32 = vpop.eup %2097 }
 0x19f   :  { %1302 = vmatpush.xpose.msrb.mxu2 %v2776_v32  ;;  %v2100_v43 = vpop.eup %2099 }
 0x1a0   :  { %648 = vmax.xlane.f32.xlu0 %v2774_v18 }
 0x1a1   :  { %622 = vmax.xlane.f32.xlu2 %v2783_v22 }
 0x1a3   :  { %1303 = vmatpush.xpose.msrb.mxu2 %v2100_v43  ;;  %v597_v35 = vpop.xlane.xlu1 %596 }
 0x1a4   :  { %v655_v3 = vsub.f32 %v2561_v28, %v597_v35 }
 0x1a6   :  { %v692_v20 = vmul.f32 1.442695, %v655_v3 }
 0x1a8   :  { %2101 = vpow2.f32 %v692_v20  ;;  %644 = vmax.xlane.f32.xlu0 %v2791_v37  ;;  %v690_v20 = vmul.f32 1.442695, %v654_v46 }
 0x1a9   :  { %618 = vmax.xlane.f32.xlu2 %v2797_v16 }
 0x1ae   :  { %v2102_v28 = vpop.eup %2101 }
 0x1af   :  { %756 = vadd.xlane.f32.xlu1 %v2102_v28 }
 0x1b0   :  { %636 = vmax.xlane.f32.xlu0 %v2805_v56 }
 0x1b1   :  { %640 = vmax.xlane.f32.xlu2 %v2811_v9 }
 0x1b3   :  { %v601_v31 = vpop.xlane.xlu0 %600 }
 0x1b4   :  { %v657_v23 = vsub.f32 %v2583_v52, %v601_v31  ;;  %v346_v31 = vpop.f32.mrf.mxu0 }
 0x1b6   :  { %v696_v62 = vmul.f32 1.442695, %v657_v23 }
 0x1b7   :  { %750 = vadd.xlane.f32.xlu1 %v2100_v43  ;;  %v587_v43 = vpop.xlane.xlu1 %586 }
 0x1b8   :  { %2103 = vpow2.f32 %v696_v62  ;;  %v650_v50 = vsub.f32 %v2571_v40, %v587_v43 }
 0x1b9   :  { %642 = vmax.xlane.f32.xlu2 %v2819_v14 }
 0x1ba   :  { %v682_v15 = vmul.f32 1.442695, %v650_v50 }
 0x1bb   :  { %v599_v35 = vpop.xlane.xlu0 %598 }
 0x1bc   :  { %v656_v12 = vsub.f32 %v2595_v0, %v599_v35  ;;  %v349_v21 = vpop.f32.mrf.mxu0 }
 0x1be   :  { %v2104_v3 = vpop.eup %2103  ;;  %v694_v52 = vmul.f32 1.442695, %v656_v12 }
 0x1bf   :  { %1331 = vmatpush.xpose.msrb.mxu3 %v2104_v3 }
 0x1c0   :  { %2105 = vpow2.f32 %v694_v52 }
 0x1c1   :  { %760 = vadd.xlane.f32.xlu2 %v2104_v3  ;;  %2107 = vpow2.f32 %v690_v20 }
 0x1c3   :  { %v589_v23 = vpop.xlane.xlu0 %588 }
 0x1c4   :  { %v651_v13 = vsub.f32 %v2609_v11, %v589_v23  ;;  %v352_v35 = vpop.f32.mrf.mxu0 }
 0x1c6   :  { %v2106_v62 = vpop.eup %2105  ;;  %v684_v41 = vmul.f32 1.442695, %v651_v13 }
 0x1c7   :  { %1332 = vmatpush.xpose.msrb.mxu3 %v2106_v62  ;;  %758 = vadd.xlane.f32.xlu0 %v2106_v62  ;;  %v2108_v0 = vpop.eup %2107 }
 0x1c8   :  { %2109 = vpow2.f32 %v684_v41 }
 0x1c9   :  { %754 = vadd.xlane.f32.xlu2 %v2108_v0  ;;  %2111 = vpow2.f32 %v682_v15 }
 0x1cb   :  { %1333 = vmatpush.xpose.msrb.mxu3 %v2102_v28 }
 0x1cc   :  { %v355_v20 = vpop.f32.mrf.mxu0 }
 0x1ce   :  { %v2110_v46 = vpop.eup %2109 }
 0x1cf   :  { %1304 = vmatpush.xpose.msrb.mxu2 %v2110_v46  ;;  %1334 = vmatpush.xpose.msrb.mxu3 %v2108_v0  ;;  %v2112_v40 = vpop.eup %2111 }
 0x1d0   :  { %752 = vadd.xlane.f32.xlu0 %v2776_v32 }
 0x1d1   :  { %748 = vadd.xlane.f32.xlu2 %v2110_v46 }
 0x1d2   :  { %1335 = vmatmul.f32.vlgmr.msrb.gmra.mxu3 %v352_v35 }
 0x1d3   :  { %1305 = vmatpush.xpose.msrb.mxu2 %v2112_v40  ;;  %v609_v11 = vpop.xlane.xlu1 %608 }
 0x1d4   :  { %v661_v12 = vsub.f32 %v2626_v34, %v609_v11  ;;  %v358_v28 = vpop.f32.mrf.mxu0 }
 0x1d6   :  { %v704_v3 = vmul.f32 1.442695, %v661_v12  ;;  %1306 = vmatmul.f32.vlgmr.msrb.gmra.mxu2 %v340_v49 }
 0x1d8   :  { %2113 = vpow2.f32 %v704_v3  ;;  %746 = vadd.xlane.f32.xlu0 %v2112_v40  ;;  %v2834_v3 = vpop.f32.mrf.mxu2 }
 0x1da   :  { %1338 = vmatmul.f32.gmra.mxu3 %v355_v20 }
 0x1db   :  { %v611_v52 = vpop.xlane.xlu1 %610 }
 0x1dc   :  { %v361_v32 = vpop.f32.mrf.mxu0 }
 0x1de   :  { %v2114_v41 = vpop.eup %2113  ;;  %1309 = vmatmul.f32.gmra.mxu2 %v343_v19 }
 0x1df   :  { %1360 = vmatpush.xpose.msra.mxu2 %v2114_v41 }
 0x1e2   :  { %1341 = vmatmul.f32.gmra.mxu3 %v358_v28 }
 0x1e3   :  { %v633_v34 = vpop.xlane.xlu1 %632 }
 0x1e6   :  { %1312 = vmatmul.f32.gmra.mxu2 %v346_v31  ;;  %v662_v31 = vsub.f32 %v2642_v8, %v611_v52  ;;  %v673_v8 = vsub.f32 %v2653_v10, %v633_v34  ;;  %v2837_v52 = vpop.f32.mrf.mxu1 }
 0x1e8   :  { %v706_v40 = vmul.f32 1.442695, %v662_v31 }
 0x1ea   :  { %1344 = vmatmul.f32.gmra.mxu3 %v361_v32 }
 0x1eb   :  { %v615_v43 = vpop.xlane.xlu0 %614  ;;  %v629_v35 = vpop.xlane.xlu1 %628 }
 0x1ec   :  { %v664_v23 = vsub.f32 %v2671_v55, %v615_v43  ;;  %v671_v32 = vsub.f32 %v2667_v53, %v629_v35  ;;  %v728_v43 = vmul.f32 1.442695, %v673_v8  ;;  %v376_v53 = vpop.f32.mrf.mxu2 }
 0x1ee   :  { %v710_v50 = vmul.f32 1.442695, %v664_v23  ;;  %1315 = vmatmul.f32.gmra.mxu2 %v349_v21 }
 0x1f0   :  { %2115 = vpow2.f32 %v710_v50  ;;  %v724_v50 = vmul.f32 1.442695, %v671_v32 }
 0x1f3   :  { %v607_v49 = vpop.xlane.xlu0 %606 }
 0x1f4   :  { %v660_v13 = vsub.f32 %v2694_v1, %v607_v49  ;;  %v617_v62 = vpop.xlane.xlu2 %616 }
 0x1f5   :  { %v665_v19 = vsub.f32 %v2698_v4, %v617_v62 }
 0x1f6   :  { %v702_v0 = vmul.f32 1.442695, %v660_v13  ;;  %v2116_v15 = vpop.eup %2115 }
 0x1f7   :  { %v712_v46 = vmul.f32 1.442695, %v665_v19  ;;  %774 = vadd.xlane.f32.xlu2 %v2116_v15  ;;  %v2842_v19 = vpop.f32.mrf.mxu1 }
 0x1f8   :  { %2117 = vpow2.f32 %v702_v0 }
 0x1f9   :  { %2119 = vpow2.f32 %v712_v46 }
 0x1fa   :  { %2121 = vpow2.f32 %v706_v40 }
 0x1fb   :  { %v603_v55 = vpop.xlane.xlu0 %602 }
 0x1fc   :  { %v658_v21 = vsub.f32 %v2719_v26, %v603_v55  ;;  %v613_v11 = vpop.xlane.xlu2 %612  ;;  %v621_v26 = vpop.xlane.xlu1 %620 }
 0x1fd   :  { %v663_v12 = vsub.f32 %v2725_v29, %v613_v11  ;;  %v667_v8 = vsub.f32 %v2690_v59, %v621_v26 }
 0x1fe   :  { %v698_v1 = vmul.f32 1.442695, %v658_v21  ;;  %v2118_v4 = vpop.eup %2117  ;;  %v364_v21 = vpop.f32.mrf.mxu0 }
 0x1ff   :  { %v708_v20 = vmul.f32 1.442695, %v663_v12  ;;  %v2120_v28 = vpop.eup %2119  ;;  %1361 = vmatpush.xpose.msra.mxu2 %v2118_v4  ;;  %768 = vadd.xlane.f32.xlu2 %v2114_v41  ;;  %v379_v12 = vpop.f32.mrf.mxu2 }
 0x200   :  { %2123 = vpow2.f32 %v698_v1  ;;  %776 = vadd.xlane.f32.xlu1 %v2120_v28  ;;  %1389 = vmatpush.xpose.msra.mxu3 %v2120_v28  ;;  %v2122_v13 = vpop.eup %2121  ;;  %v2847_v28 = vpop.f32.mrf.mxu1 }
 0x201   :  { %2125 = vpow2.f32 %v708_v20 }
 0x202   :  { %2127 = vpow2.f32 %v728_v43 }
 0x203   :  { %v625_v29 = vpop.xlane.xlu0 %624  ;;  %2129 = vpow2.f32 %v724_v50 }
 0x204   :  { %v605_v23 = vpop.xlane.xlu2 %604  ;;  %1390 = vmatpush.xpose.msra.mxu3 %v2116_v15  ;;  %v669_v62 = vsub.f32 %v2740_v17, %v625_v29 }
 0x205   :  { %v659_v49 = vsub.f32 %v2747_v25, %v605_v23  ;;  %v647_v25 = vpop.xlane.xlu1 %646 }
 0x206   :  { %v2124_v10 = vpop.eup %2123  ;;  %v720_v15 = vmul.f32 1.442695, %v669_v62 }
 0x207   :  { %v700_v34 = vmul.f32 1.442695, %v659_v49  ;;  %v2126_v41 = vpop.eup %2125  ;;  %762 = vadd.xlane.f32.xlu2 %v2124_v10  ;;  %v680_v49 = vsub.f32 %v2714_v61, %v647_v25 }
 0x208   :  { %770 = vadd.xlane.f32.xlu1 %v2122_v13  ;;  %772 = vadd.xlane.f32.xlu0 %v2126_v41  ;;  %v2128_v35 = vpop.eup %2127  ;;  %v2854_v61 = vpop.f32.mrf.mxu1 }
 0x209   :  { %2131 = vpow2.f32 %v700_v34  ;;  %1391 = vmatpush.xpose.msra.mxu3 %v2126_v41  ;;  %v2130_v55 = vpop.eup %2129  ;;  %v382_v34 = vpop.f32.mrf.mxu2 }
 0x20a   :  { %2133 = vpow2.f32 %v720_v15 }
 0x20b   :  { %v627_v0 = vpop.xlane.xlu0 %626 }
 0x20c   :  { %v631_v46 = vpop.xlane.xlu2 %630  ;;  %v670_v11 = vsub.f32 %v2761_v6, %v627_v0 }
 0x20d   :  { %v672_v31 = vsub.f32 %v2768_v7, %v631_v46  ;;  %1392 = vmatpush.xpose.msra.mxu3 %v2122_v13  ;;  %v716_v13 = vmul.f32 1.442695, %v667_v8 }
 0x20e   :  { %v722_v43 = vmul.f32 1.442695, %v670_v11 }
 0x20f   :  { %v726_v40 = vmul.f32 1.442695, %v672_v31  ;;  %v2132_v17 = vpop.eup %2131  ;;  %788 = vadd.xlane.f32.xlu2 %v2130_v55 }
 0x210   :  { %1393 = vmatmul.f32.vlgmr.msra.gmra.mxu3 %v376_v53  ;;  %766 = vadd.xlane.f32.xlu0 %v2118_v4  ;;  %v2134_v29 = vpop.eup %2133  ;;  %v639_v4 = vpop.xlane.xlu1 %638 }
 0x211   :  { %1447 = vmatpush.xpose.msrb.mxu3 %v2128_v35  ;;  %2135 = vpow2.f32 %v726_v40  ;;  %764 = vadd.xlane.f32.xlu1 %v2132_v17  ;;  %v676_v31 = vsub.f32 %v2735_v58, %v639_v4 }
 0x212   :  { %1362 = vmatpush.xpose.msra.mxu2 %v2132_v17 }
 0x213   :  { %v649_v1 = vpop.xlane.xlu0 %648  ;;  %v734_v8 = vmul.f32 1.442695, %v676_v31 }
 0x214   :  { %v681_v7 = vsub.f32 %v2774_v18, %v649_v1  ;;  %v623_v20 = vpop.xlane.xlu2 %622  ;;  %v367_v18 = vpop.f32.mrf.mxu0 }
 0x215   :  { %v668_v32 = vsub.f32 %v2783_v22, %v623_v20  ;;  %v742_v22 = vmul.f32 1.442695, %v680_v49 }
 0x216   :  { %1363 = vmatpush.xpose.msra.mxu2 %v2124_v10  ;;  %v744_v23 = vmul.f32 1.442695, %v681_v7  ;;  %v513_v7 = vpop.f32.mrf.mxu1 }
 0x217   :  { %v718_v6 = vmul.f32 1.442695, %v668_v32  ;;  %v2136_v50 = vpop.eup %2135 }
 0x218   :  { %1396 = vmatmul.f32.gmra.mxu3 %v379_v12  ;;  %792 = vadd.xlane.f32.xlu0 %v2128_v35  ;;  %v635_v25 = vpop.xlane.xlu1 %634 }
 0x219   :  { %2137 = vpow2.f32 %v718_v6  ;;  %1364 = vmatmul.f32.vlgmr.msra.gmra.mxu2 %v364_v21  ;;  %790 = vadd.xlane.f32.xlu1 %v2136_v50  ;;  %v385_v21 = vpop.f32.mrf.mxu2  ;;  %v674_v58 = vsub.f32 %v2756_v38, %v635_v25 }
 0x21a   :  { %1418 = vmatpush.xpose.msrb.mxu2 %v2134_v29  ;;  %2139 = vpow2.f32 %v722_v43  ;;  %1448 = vmatpush.xpose.msrb.mxu3 %v2136_v50  ;;  %v2863_v43 = vpop.f32.mrf.mxu3 }
 0x21b   :  { %2141 = vpow2.f32 %v744_v23  ;;  %v645_v59 = vpop.xlane.xlu0 %644  ;;  %v730_v6 = vmul.f32 1.442695, %v674_v58 }
 0x21c   :  { %v679_v26 = vsub.f32 %v2791_v37, %v645_v59  ;;  %v619_v10 = vpop.xlane.xlu2 %618  ;;  %2143 = vpow2.f32 %v716_v13  ;;  %v370_v17 = vpop.f32.mrf.mxu0 }
 0x21d   :  { %v666_v41 = vsub.f32 %v2797_v16, %v619_v10  ;;  %2145 = vpow2.f32 %v742_v22 }
 0x21e   :  { %v740_v53 = vmul.f32 1.442695, %v679_v26  ;;  %1449 = vmatpush.xpose.msrb.mxu3 %v2130_v55  ;;  %v516_v38 = vpop.f32.mrf.mxu1 }
 0x21f   :  { %v2138_v62 = vpop.eup %2137  ;;  %v714_v0 = vmul.f32 1.442695, %v666_v41 }
 0x220   :  { %v2140_v15 = vpop.eup %2139  ;;  %782 = vadd.xlane.f32.xlu2 %v2138_v62  ;;  %1419 = vmatpush.xpose.msrb.mxu2 %v2138_v62 }
 0x221   :  { %v2142_v46 = vpop.eup %2141  ;;  %2147 = vpow2.f32 %v714_v0  ;;  %1367 = vmatmul.f32.gmra.mxu2 %v367_v18  ;;  %1399 = vmatmul.f32.gmra.mxu3 %v382_v34 }
 0x222   :  { %786 = vadd.xlane.f32.xlu0 %v2140_v15  ;;  %784 = vadd.xlane.f32.xlu1 %v2134_v29  ;;  %v2144_v37 = vpop.eup %2143  ;;  %2149 = vpow2.f32 %v740_v53  ;;  %v2859_v32 = vpop.xlane.xlu1 %756 }
 0x223   :  { %1450 = vmatpush.xpose.msrb.mxu3 %v2140_v15  ;;  %v637_v35 = vpop.xlane.xlu0 %636  ;;  %v2146_v40 = vpop.eup %2145  ;;  %vm885_vm2 = vweird.f32 %v2859_v32 }
 0x224   :  { %v641_v16 = vpop.xlane.xlu2 %640  ;;  %1420 = vmatpush.xpose.msrb.mxu2 %v2144_v37  ;;  %v675_v1 = vsub.f32 %v2805_v56, %v637_v35  ;;  %v2874_v22 = vpop.f32.mrf.mxu3 }
 0x225   :  { %v677_v55 = vsub.f32 %v2811_v9, %v641_v16  ;;  %v889_v16 = vand.u32 2147483647, %v2859_v32 }
 0x226   :  { %v732_v9 = vmul.f32 1.442695, %v675_v1  ;;  %v519_v15 = vpop.f32.mrf.mxu1 }
 0x227   :  { %1505 = vmatpush.xpose.msra.mxu3 %v2142_v46  ;;  %v2148_v11 = vpop.eup %2147  ;;  %v736_v12 = vmul.f32 1.442695, %v677_v55  ;;  %vm2901_vm6 = vcmp.eq.f32.partialorder %v889_v16, 8.507059e+37 }
 0x228   :  { %808 = vadd.xlane.f32.xlu2 %v2142_v46  ;;  %v2150_v20 = vpop.eup %2149  ;;  %1421 = vmatpush.xpose.msrb.mxu2 %v2148_v11 }
 0x229   :  { %2151 = vpow2.f32 %v736_v12  ;;  %1370 = vmatmul.f32.gmra.mxu2 %v370_v17  ;;  %1402 = vmatmul.f32.gmra.mxu3 %v385_v21 }
 0x22a   :  { %780 = vadd.xlane.f32.xlu0 %v2144_v37  ;;  %778 = vadd.xlane.f32.xlu1 %v2148_v11  ;;  %2153 = vpow2.f32 %v734_v8  ;;  %v2867_v49 = vpop.xlane.xlu1 %750 }
 0x22b   :  { %1506 = vmatpush.xpose.msra.mxu3 %v2146_v40  ;;  %2155 = vrcp.f32 %v2859_v32  ;;  %vm843_vm10 = vweird.f32 %v2867_v49 }
 0x22c   :  { %v643_v29 = vpop.xlane.xlu2 %642  ;;  %2157 = vpow2.f32 %v732_v9  ;;  %v2892_v17 = vpop.f32.mrf.mxu3 }
 0x22d   :  { %v678_v56 = vsub.f32 %v2819_v14, %v643_v29 }
 0x22f   :  { %1507 = vmatpush.xpose.msra.mxu3 %v2150_v20  ;;  %v2152_v4 = vpop.eup %2151  ;;  %v738_v23 = vmul.f32 1.442695, %v678_v56 }
 0x230   :  { %1476 = vmatpush.xpose.msra.mxu2 %v2152_v4  ;;  %v2154_v50 = vpop.eup %2153 }
 0x231   :  { %2159 = vpow2.f32 %v738_v23  ;;  %1373 = vmatmul.f32.gmra.mxu2 %v2834_v3  ;;  %1451 = vmatmul.f32.vlgmr.msrb.gmra.mxu3 %v513_v7  ;;  %v2869_v14 = vpop.eup %2155 }
 0x232   :  { %806 = vadd.xlane.f32.xlu0 %v2146_v40  ;;  %804 = vadd.xlane.f32.xlu1 %v2150_v20  ;;  %2161 = vpow2.f32 %v730_v6  ;;  %v2158_v59 = vpop.eup %2157  ;;  %v881_v3 = vmul.f32 %v2869_v14, %v2859_v32  ;;  %vm886_vm5 = vweird.f32 %v2869_v14 }
 0x233   :  { %vm2930_vm12 = vmor %vm885_vm2, %vm886_vm5 }
 0x234   :  { %v761_v13 = vpop.xlane.xlu2 %760  ;;  %1477 = vmatpush.xpose.msra.mxu2 %v2154_v50  ;;  %v882_v41 = vsub.f32 1.0, %v881_v3  ;;  %v849_v3 = vand.u32 2147483648, %v2867_v49 }
 0x235   :  { %2163 = vrcp.f32 %v761_v13  ;;  %v917_v35 = vand.u32 2147483647, %v761_v13  ;;  %v919_v40 = vand.u32 2147483648, %v761_v13  ;;  %vm913_vm4 = vweird.f32 %v761_v13 }
 0x236   :  { %2165 = vrcp.f32 %v2867_v49  ;;  %v883_v25 = vmul.f32 %v2869_v14, %v882_v41 }
 0x237   :  { %v2160_v18 = vpop.eup %2159  ;;  %vm2905_vm7 = vcmp.eq.f32.partialorder %v917_v35, 8.507059e+37 }
 0x238   :  { %802 = vadd.xlane.f32.xlu2 %v2160_v18  ;;  %1478 = vmatpush.xpose.msra.mxu2 %v2158_v59  ;;  %v2162_v26 = vpop.eup %2161  ;;  %v884_v8 = vadd.f32 %v2869_v14, %v883_v25 }
 0x239   :  { %1422 = vmatmul.f32.vlgmr.msrb.gmra.mxu2 %v2837_v52  ;;  %1454 = vmatmul.f32.gmra.mxu3 %v516_v38  ;;  %v891_v52 = vand.u32 2147483648, %v2859_v32 }
 0x23a   :  { %798 = vadd.xlane.f32.xlu1 %v2154_v50  ;;  %800 = vadd.xlane.f32.xlu0 %v2152_v4  ;;  %v2877_v10 = vpop.xlane.xlu0 %758  ;;  %v920_v4 = vor.u32 1.1754944e-38, %v919_v40 }
 0x23b   :  { %v2164_v34 = vpop.eup %2163  ;;  %1508 = vmatpush.xpose.msra.mxu3 %v2160_v18  ;;  %2167 = vrcp.f32 %v2877_v10  ;;  %v892_v21 = vor.u32 1.1754944e-38, %v891_v52  ;;  %v905_v23 = vand.u32 2147483648, %v2877_v10  ;;  %v903_v6 = vand.u32 2147483647, %v2877_v10 }
 0x23c   :  { %v2880_v62 = vpop.eup %2165  ;;  %v909_v53 = vmul.f32 %v2164_v34, %v761_v13  ;;  %v2882_v0 = vpop.xlane.xlu2 %754  ;;  %1479 = vmatpush.xpose.msra.mxu2 %v2162_v26  ;;  %vm914_vm3 = vweird.f32 %v2164_v34  ;;  %vm899_vm11 = vweird.f32 %v2877_v10 }
 0x23d   :  { %2169 = vrcp.f32 %v2882_v0  ;;  %v839_v37 = vmul.f32 %v2880_v62, %v2867_v49  ;;  %vm915_vm8 = vmor %vm913_vm4, %vm914_vm3  ;;  %v522_v13 = vpop.f32.mrf.mxu1  ;;  %v906_v52 = vor.u32 1.1754944e-38, %v905_v23  ;;  %vm904_vm15 = vcmp.eq.f32.partialorder %v903_v6, 8.507059e+37 }
 0x23e   :  { %v910_v46 = vsub.f32 1.0, %v909_v53  ;;  %vm871_vm1 = vweird.f32 %v2882_v0  ;;  %vm844_vm2 = vweird.f32 %v2880_v62 }
 0x23f   :  { %v840_v7 = vsub.f32 1.0, %v839_v37  ;;  %v875_v37 = vand.u32 2147483647, %v2882_v0 }
 0x240   :  { %v911_v31 = vmul.f32 %v2164_v34, %v910_v46  ;;  %796 = vadd.xlane.f32.xlu2 %v2158_v59  ;;  %v877_v46 = vand.u32 2147483648, %v2882_v0 }
 0x241   :  { %v2168_v55 = vpop.eup %2167  ;;  %1425 = vmatmul.f32.gmra.mxu2 %v2842_v19  ;;  %1457 = vmatmul.f32.gmra.mxu3 %v519_v15  ;;  %v841_v18 = vmul.f32 %v2880_v62, %v840_v7  ;;  %vm876_vm4 = vcmp.eq.f32.partialorder %v875_v37, 8.507059e+37 }
 0x242   :  { %v912_v11 = vadd.f32 %v2164_v34, %v911_v31  ;;  %v895_v12 = vmul.f32 %v2168_v55, %v2877_v10  ;;  %794 = vadd.xlane.f32.xlu0 %v2162_v26  ;;  %vm900_vm9 = vweird.f32 %v2168_v55 }
 0x243   :  { %v2895_v1 = vpop.eup %2169  ;;  %v2897_v20 = vpop.xlane.xlu0 %752  ;;  %vm901_vm13 = vmor %vm899_vm11, %vm900_vm9 }
 0x244   :  { %v896_v9 = vsub.f32 1.0, %v895_v12  ;;  %v867_v29 = vmul.f32 %v2895_v1, %v2882_v0  ;;  %2171 = vrcp.f32 %v2897_v20  ;;  %v2912_v56 = vpop.xlane.xlu2 %748  ;;  %v916_v59 = vsel %vm915_vm8, %v2164_v34, %v912_v11 }
 0x245   :  { %2173 = vrcp.f32 %v2912_v56  ;;  %v921_v26 = vsel %vm2905_vm7, %v920_v4, %v916_v59  ;;  %vm872_vm14 = vweird.f32 %v2895_v1  ;;  %v842_v0 = vadd.f32 %v2880_v62, %v841_v18 }
 0x246   :  { %v897_v38 = vmul.f32 %v2168_v55, %v896_v9  ;;  %v868_v50 = vsub.f32 1.0, %v867_v29  ;;  %v1265_v53 = vmul.f32 %v921_v26, %v2447_v45  ;;  %v888_v45 = vsel %vm2930_vm12, %v2869_v14, %v884_v8  ;;  %v540_v14 = vpop.f32.mrf.mxu3  ;;  %vm873_vm3 = vmor %vm871_vm1, %vm872_vm14 }
 0x247   :  { %v893_v40 = vsel %vm2901_vm6, %v892_v21, %v888_v45  ;;  %v878_v11 = vor.u32 1.1754944e-38, %v877_v46  ;;  %v863_v58 = vand.u32 2147483648, %v2897_v20  ;;  %v847_v29 = vand.u32 2147483647, %v2867_v49  ;;  %vm2966_vm6 = vmor %vm843_vm10, %vm844_vm2 }
 0x248   :  { %v869_v41 = vmul.f32 %v2895_v1, %v868_v50  ;;  %v898_v15 = vadd.f32 %v2168_v55, %v897_v38  ;;  %1587 = vmatpush.msrb.mxu3 %v1265_v53  ;;  %v861_v21 = vand.u32 2147483647, %v2897_v20  ;;  %v1263_v23 = vmul.f32 %v893_v40, %v2429_v39 }
 0x249   :  { %1428 = vmatmul.f32.gmra.mxu2 %v2847_v28  ;;  %1460 = vmatmul.f32.gmra.mxu3 %v522_v13  ;;  %v846_v6 = vsel %vm2966_vm6, %v2880_v62, %v842_v0  ;;  %vm857_vm8 = vweird.f32 %v2897_v20  ;;  %vm829_vm9 = vweird.f32 %v2912_v56  ;;  %v835_v49 = vand.u32 2147483648, %v2912_v56 }
 0x24a   :  { %v2172_v10 = vpop.eup %2171  ;;  %v902_v32 = vsel %vm901_vm13, %v2168_v55, %v898_v15  ;;  %v870_v25 = vadd.f32 %v2895_v1, %v869_v41  ;;  %v864_v39 = vor.u32 1.1754944e-38, %v863_v58  ;;  %v833_v59 = vand.u32 2147483647, %v2912_v56 }
 0x24b   :  { %v2942_v16 = vpop.eup %2173  ;;  %v853_v28 = vmul.f32 %v2172_v10, %v2897_v20  ;;  %v2946_v31 = vpop.xlane.xlu0 %746  ;;  %v907_v35 = vsel %vm904_vm15, %v906_v52, %v902_v32  ;;  %vm858_vm5 = vweird.f32 %v2172_v10  ;;  %v850_v20 = vor.u32 1.1754944e-38, %v849_v3 }
 0x24c   :  { %v825_v55 = vmul.f32 %v2942_v16, %v2912_v56  ;;  %2175 = vrcp.f32 %v2946_v31  ;;  %v1264_v7 = vmul.f32 %v907_v35, %v2438_v42  ;;  %v874_v8 = vsel %vm873_vm3, %v2895_v1, %v870_v25  ;;  %vm859_vm10 = vmor %vm857_vm8, %vm858_vm5 }
 0x24d   :  { %v854_v12 = vsub.f32 1.0, %v853_v28  ;;  %v879_v19 = vsel %vm876_vm4, %v878_v11, %v874_v8  ;;  %vm830_vm7 = vweird.f32 %v2942_v16  ;;  %vm862_vm11 = vcmp.eq.f32.partialorder %v861_v21, 8.507059e+37 }
 0x24e   :  { %v826_v9 = vsub.f32 1.0, %v825_v55  ;;  %1588 = vmatpush.msrb.mxu3 %v1264_v7  ;;  %v1262_v62 = vmul.f32 %v879_v19, %v2420_v36  ;;  %vm2990_vm12 = vmor %vm829_vm9, %vm830_vm7  ;;  %vm848_vm13 = vcmp.eq.f32.partialorder %v847_v29, 8.507059e+37  ;;  %v836_v41 = vor.u32 1.1754944e-38, %v835_v49  ;;  %v543_v52 = vpop.f32.mrf.mxu3 }
 0x24f   :  { %v855_v4 = vmul.f32 %v2172_v10, %v854_v12  ;;  %v851_v34 = vsel %vm848_vm13, %v850_v20, %v846_v6  ;;  %v821_v56 = vand.u32 2147483648, %v2946_v31  ;;  %vm834_vm14 = vcmp.eq.f32.partialorder %v833_v59, 8.507059e+37 }
 0x250   :  { %v827_v1 = vmul.f32 %v2942_v16, %v826_v9  ;;  %1589 = vmatpush.msrb.mxu3 %v1263_v23  ;;  %v1260_v32 = vmul.f32 %v851_v34, %v2402_v30  ;;  %vm815_vm1 = vweird.f32 %v2946_v31 }
 0x251   :  { %v856_v38 = vadd.f32 %v2172_v10, %v855_v4  ;;  %1431 = vmatmul.f32.gmra.mxu2 %v2854_v61  ;;  %1509 = vmatmul.f32.vlgmr.msra.gmra.mxu3 %v2892_v17  ;;  %v525_v17 = vpop.f32.mrf.mxu1  ;;  %v822_v37 = vor.u32 1.1754944e-38, %v821_v56 }
 0x252   :  { %v2176_v50 = vpop.eup %2175  ;;  %v828_v13 = vadd.f32 %v2942_v16, %v827_v1  ;;  %1590 = vmatpush.msrb.mxu3 %v1262_v62 }
 0x253   :  { %v811_v18 = vmul.f32 %v2176_v50, %v2946_v31  ;;  %v860_v26 = vsel %vm859_vm10, %v2172_v10, %v856_v38  ;;  %vm816_vm15 = vweird.f32 %v2176_v50  ;;  %v819_v10 = vand.u32 2147483647, %v2946_v31 }
 0x254   :  { %v865_v36 = vsel %vm862_vm11, %v864_v39, %v860_v26  ;;  %v832_v3 = vsel %vm2990_vm12, %v2942_v16, %v828_v13  ;;  %vm817_vm2 = vmor %vm815_vm1, %vm816_vm15 }
 0x255   :  { %v812_v53 = vsub.f32 1.0, %v811_v18  ;;  %v1261_v15 = vmul.f32 %v865_v36, %v2411_v33  ;;  %v837_v45 = vsel %vm834_vm14, %v836_v41, %v832_v3  ;;  %vm820_vm3 = vcmp.eq.f32.partialorder %v819_v10, 8.507059e+37 }
 0x256   :  { %v1259_v33 = vmul.f32 %v837_v45, %v2393_v27  ;;  %v546_v40 = vpop.f32.mrf.mxu3 }
 0x257   :  { %v813_v46 = vmul.f32 %v2176_v50, %v812_v53  ;;  %1546 = vmatpush.msrb.mxu2 %v1261_v15 }
 0x259   :  { %1480 = vmatmul.f32.vlgmr.msra.gmra.mxu2 %v525_v17  ;;  %1512 = vmatmul.f32.gmra.mxu3 %v540_v14  ;;  %v814_v25 = vadd.f32 %v2176_v50, %v813_v46  ;;  %v528_v55 = vpop.f32.mrf.mxu1  ;;  %v1307_v14 = vpop.f32.mrf.mxu2 }
 0x25a   :  { %1547 = vmatpush.msrb.mxu2 %v1260_v32 }
 0x25b   :  { %v818_v16 = vsel %vm817_vm2, %v2176_v50, %v814_v25 }
 0x25c   :  { %1548 = vmatpush.msrb.mxu2 %v1259_v33  ;;  %v823_v28 = vsel %vm820_vm3, %v822_v37, %v818_v16 }
 0x25d   :  { %v1258_v35 = vmul.f32 %v823_v28, %v2384_v24 }
 0x25e   :  { %v1336_v30 = vpop.f32.mrf.mxu3 }
 0x25f   :  { %1549 = vmatpush.msrb.mxu2 %v1258_v35 }
 0x261   :  { %1483 = vmatmul.f32.gmra.mxu2 %v528_v55  ;;  %1515 = vmatmul.f32.gmra.mxu3 %v543_v52 }
 0x266   :  { %v1339_v27 = vpop.f32.mrf.mxu3 }
 0x269   :  { %1486 = vmatmul.f32.gmra.mxu2 %v2863_v43  ;;  %1518 = vmatmul.f32.gmra.mxu3 %v546_v40 }
 0x26a   :  { %v775_v31 = vpop.xlane.xlu2 %774 }
 0x26b   :  { %2177 = vrcp.f32 %v775_v31  ;;  %v1017_v21 = vand.u32 2147483648, %v775_v31  ;;  %v1015_v23 = vand.u32 2147483647, %v775_v31  ;;  %vm1011_vm5 = vweird.f32 %v775_v31 }
 0x26d   :  { %v1018_v18 = vor.u32 1.1754944e-38, %v1017_v21  ;;  %vm3042_vm7 = vcmp.eq.f32.partialorder %v1015_v23, 8.507059e+37 }
 0x26e   :  { %v1342_v4 = vpop.f32.mrf.mxu3 }
 0x271   :  { %1489 = vmatmul.f32.gmra.mxu2 %v2874_v22  ;;  %2054 = vmatmul.msk.f32.vlgmr.msrb.gmra.mxu3 %vm82_vm0, %v1336_v30  ;;  %v3007_v0 = vpop.eup %2177  ;;  %v1310_v22 = vpop.f32.mrf.mxu2 }
 0x272   :  { %v1007_v24 = vmul.f32 %v3007_v0, %v775_v31  ;;  %v769_v11 = vpop.xlane.xlu2 %768  ;;  %vm1012_vm4 = vweird.f32 %v3007_v0 }
 0x273   :  { %v3010_v12 = vpop.xlane.xlu1 %776  ;;  %2179 = vrcp.f32 %v769_v11  ;;  %v973_v38 = vand.u32 2147483647, %v769_v11  ;;  %v975_v39 = vand.u32 2147483648, %v769_v11  ;;  %vm969_vm9 = vweird.f32 %v769_v11  ;;  %vm3053_vm11 = vmor %vm1011_vm5, %vm1012_vm4 }
 0x274   :  { %2181 = vrcp.f32 %v3010_v12  ;;  %v1008_v43 = vsub.f32 1.0, %v1007_v24  ;;  %v1029_v50 = vand.u32 2147483647, %v3010_v12  ;;  %v1031_v62 = vand.u32 2147483648, %v3010_v12 }
 0x275   :  { %vm1025_vm8 = vweird.f32 %v3010_v12  ;;  %vm3047_vm10 = vcmp.eq.f32.partialorder %v973_v38, 8.507059e+37  ;;  %v976_v36 = vor.u32 1.1754944e-38, %v975_v39 }
 0x276   :  { %v1009_v58 = vmul.f32 %v3007_v0, %v1008_v43  ;;  %vm3060_vm13 = vcmp.eq.f32.partialorder %v1029_v50, 8.507059e+37  ;;  %v1032_v15 = vor.u32 1.1754944e-38, %v1031_v62  ;;  %v1345_v31 = vpop.f32.mrf.mxu3 }
 0x278   :  { %v1010_v59 = vadd.f32 %v3007_v0, %v1009_v58 }
 0x279   :  { %2050 = vmatmul.msk.f32.vlgmr.msrb.gmra.mxu2 %vm82_vm0, %v1307_v14  ;;  %2055 = vmatmul.msk.f32.gmra.mxu3 %vm82_vm0, %v1339_v27  ;;  %v3015_v7 = vpop.eup %2179  ;;  %v1313_v35 = vpop.f32.mrf.mxu2 }
 0x27a   :  { %v3017_v8 = vpop.eup %2181  ;;  %v965_v9 = vmul.f32 %v3015_v7, %v769_v11  ;;  %v3021_v29 = vpop.xlane.xlu2 %762  ;;  %vm970_vm6 = vweird.f32 %v3015_v7  ;;  %v1014_v34 = vsel %vm3053_vm11, %v3007_v0, %v1010_v59 }
 0x27b   :  { %v1021_v19 = vmul.f32 %v3017_v8, %v3010_v12  ;;  %v3025_v42 = vpop.xlane.xlu1 %770  ;;  %v3027_v1 = vpop.xlane.xlu0 %772  ;;  %vm1026_vm12 = vweird.f32 %v3017_v8  ;;  %vm3072_vm14 = vmor %vm969_vm9, %vm970_vm6  ;;  %v933_v30 = vand.u32 2147483648, %v3021_v29  ;;  %v1019_v27 = vsel %vm3042_vm7, %v1018_v18, %v1014_v34 }
 0x27c   :  { %v966_v6 = vsub.f32 1.0, %v965_v9  ;;  %2183 = vrcp.f32 %v3025_v42  ;;  %vm983_vm15 = vweird.f32 %v3025_v42  ;;  %v989_v10 = vand.u32 2147483648, %v3025_v42  ;;  %vm1027_vm2 = vmor %vm1025_vm8, %vm1026_vm12 }
 0x27d   :  { %v1022_v49 = vsub.f32 1.0, %v1021_v19  ;;  %2185 = vrcp.f32 %v3027_v1  ;;  %vm997_vm1 = vweird.f32 %v3027_v1  ;;  %v1003_v40 = vand.u32 2147483648, %v3027_v1 }
 0x27e   :  { %v967_v13 = vmul.f32 %v3015_v7, %v966_v6  ;;  %2187 = vrcp.f32 %v3021_v29  ;;  %v1001_v0 = vand.u32 2147483647, %v3027_v1  ;;  %v987_v9 = vand.u32 2147483647, %v3025_v42 }
 0x27f   :  { %v1023_v20 = vmul.f32 %v3017_v8, %v1022_v49  ;;  %v990_v19 = vor.u32 1.1754944e-38, %v989_v10  ;;  %v1004_v23 = vor.u32 1.1754944e-38, %v1003_v40  ;;  %v3129_v50 = vor.u32 1.1754944e-38, %v933_v30 }
 0x280   :  { %v968_v26 = vadd.f32 %v3015_v7, %v967_v13  ;;  %v931_v62 = vand.u32 2147483647, %v3021_v29  ;;  %vm3149_vm6 = vcmp.eq.f32.partialorder %v1001_v0, 8.507059e+37  ;;  %vm3161_vm8 = vcmp.eq.f32.partialorder %v987_v9, 8.507059e+37 }
 0x281   :  { %2051 = vmatmul.msk.f32.gmra.mxu2 %vm82_vm0, %v1310_v22  ;;  %2056 = vmatmul.msk.f32.gmra.mxu3 %vm82_vm0, %v1342_v4  ;;  %v1024_v56 = vadd.f32 %v3017_v8, %v1023_v20  ;;  %vm927_vm11 = vweird.f32 %v3021_v29  ;;  %v1316_v34 = vpop.f32.mrf.mxu2 }
 0x282   :  { %v3057_v41 = vpop.eup %2183  ;;  %v3082_v25 = vpop.xlane.xlu2 %788  ;;  %v972_v28 = vsel %vm3072_vm14, %v3015_v7, %v968_v26 }
 0x283   :  { %v3067_v52 = vpop.eup %2185  ;;  %v979_v45 = vmul.f32 %v3057_v41, %v3025_v42  ;;  %v3080_v32 = vpop.xlane.xlu0 %766  ;;  %v977_v43 = vsel %vm3047_vm10, %v976_v36, %v972_v28  ;;  %v1028_v7 = vsel %vm1027_vm2, %v3017_v8, %v1024_v56  ;;  %vm984_vm4 = vweird.f32 %v3057_v41 }
 0x284   :  { %v3084_v37 = vpop.eup %2187  ;;  %v993_v33 = vmul.f32 %v3067_v52, %v3027_v1  ;;  %2189 = vrcp.f32 %v3080_v32  ;;  %v3090_v16 = vpop.xlane.xlu1 %764  ;;  %v1269_v22 = vmul.f32 %v977_v43, %v2483_v57  ;;  %v1033_v58 = vsel %vm3060_vm13, %v1032_v15, %v1028_v7  ;;  %vm3157_vm7 = vmor %vm983_vm15, %vm984_vm4 }
 0x285   :  { %v980_v55 = vsub.f32 1.0, %v979_v45  ;;  %2191 = vrcp.f32 %v3090_v16  ;;  %v923_v11 = vmul.f32 %v3084_v37, %v3021_v29  ;;  %v1273_v4 = vmul.f32 %v1033_v58, %v2519_v5 }
 0x286   :  { %v994_v14 = vsub.f32 1.0, %v993_v33  ;;  %2193 = vrcp.f32 %v3082_v25  ;;  %vm998_vm3 = vweird.f32 %v3067_v52  ;;  %1628 = vmatpush.msra.mxu2 %v1269_v22  ;;  %v1272_v57 = vmul.f32 %v1019_v27, %v2510_v2 }
 0x287   :  { %v981_v24 = vmul.f32 %v3057_v41, %v980_v55  ;;  %v924_v49 = vsub.f32 1.0, %v923_v11  ;;  %1669 = vmatpush.msra.mxu3 %v1273_v4  ;;  %vm3135_vm5 = vmor %vm997_vm1, %vm998_vm3  ;;  %v1115_v59 = vand.u32 2147483648, %v3082_v25  ;;  %vm928_vm9 = vweird.f32 %v3084_v37 }
 0x288   :  { %v995_v12 = vmul.f32 %v3067_v52, %v994_v14  ;;  %vm955_vm10 = vweird.f32 %v3080_v32  ;;  %v961_v3 = vand.u32 2147483648, %v3080_v32  ;;  %v959_v10 = vand.u32 2147483647, %v3080_v32 }
 0x289   :  { %2052 = vmatmul.msk.f32.gmra.mxu2 %vm82_vm0, %v1313_v35  ;;  %2057 = vmatmul.msk.f32.gmra.mxu3 %vm82_vm0, %v1345_v31  ;;  %v982_v21 = vadd.f32 %v3057_v41, %v981_v24  ;;  %v925_v15 = vmul.f32 %v3084_v37, %v924_v49  ;;  %vm941_vm13 = vweird.f32 %v3090_v16  ;;  %v947_v33 = vand.u32 2147483648, %v3090_v16 }
 0x28a   :  { %v3123_v8 = vpop.eup %2189  ;;  %v996_v6 = vadd.f32 %v3067_v52, %v995_v12  ;;  %1670 = vmatpush.msra.mxu3 %v1272_v57  ;;  %v962_v55 = vor.u32 1.1754944e-38, %v961_v3  ;;  %v945_v14 = vand.u32 2147483647, %v3090_v16  ;;  %vm960_vm1 = vcmp.eq.f32.partialorder %v959_v10, 8.507059e+37 }
 0x28b   :  { %v3127_v38 = vpop.eup %2191  ;;  %v951_v5 = vmul.f32 %v3123_v8, %v3080_v32  ;;  %v3145_v20 = vpop.xlane.xlu0 %792  ;;  %v986_v42 = vsel %vm3157_vm7, %v3057_v41, %v982_v21  ;;  %vm956_vm12 = vweird.f32 %v3123_v8  ;;  %v926_v11 = vadd.f32 %v3084_v37, %v925_v15 }
 0x28c   :  { %v3140_v2 = vpop.eup %2193  ;;  %v937_v13 = vmul.f32 %v3127_v38, %v3090_v16  ;;  %v3147_v18 = vpop.xlane.xlu1 %790  ;;  %2195 = vrcp.f32 %v3145_v20  ;;  %v1000_v36 = vsel %vm3135_vm5, %v3067_v52, %v996_v6  ;;  %v991_v45 = vsel %vm3161_vm8, %v990_v19, %v986_v42  ;;  %vm3197_vm14 = vmor %vm955_vm10, %vm956_vm12 }
 0x28d   :  { %v952_v17 = vsub.f32 1.0, %v951_v5  ;;  %2197 = vrcp.f32 %v3147_v18  ;;  %v1105_v56 = vmul.f32 %v3140_v2, %v3082_v25  ;;  %v1005_v46 = vsel %vm3149_vm6, %v1004_v23, %v1000_v36  ;;  %vm929_vm6 = vmor %vm927_vm11, %vm928_vm9 }
 0x28e   :  { %v938_v53 = vsub.f32 1.0, %v937_v13  ;;  %v1271_v28 = vmul.f32 %v1005_v46, %v2501_v63  ;;  %vm942_vm15 = vweird.f32 %v3127_v38  ;;  %v1270_v0 = vmul.f32 %v991_v45, %v2492_v60 }
 0x28f   :  { %v953_v52 = vmul.f32 %v3123_v8, %v952_v17  ;;  %v1106_v63 = vsub.f32 1.0, %v1105_v56  ;;  %v1141_v12 = vand.u32 2147483647, %v3145_v20  ;;  %vm3225_vm2 = vmor %vm941_vm13, %vm942_vm15  ;;  %v3235_v19 = vor.u32 1.1754944e-38, %v1115_v59 }
 0x290   :  { %v939_v41 = vmul.f32 %v3127_v38, %v938_v53  ;;  %1671 = vmatpush.msra.mxu3 %v1271_v28  ;;  %vm1137_vm3 = vweird.f32 %v3145_v20  ;;  %vm946_vm4 = vcmp.eq.f32.partialorder %v945_v14, 8.507059e+37  ;;  %vm3245_vm5 = vcmp.eq.f32.partialorder %v931_v62, 8.507059e+37 }
 0x291   :  { %2053 = vmatmul.msk.f32.gmra.mxu2 %vm82_vm0, %v1316_v34  ;;  %v954_v35 = vadd.f32 %v3123_v8, %v953_v52  ;;  %v3240_v16 = vmul.f32 %v3140_v2, %v1106_v63  ;;  %vm3256_vm8 = vcmp.eq.f32.partialorder %v1141_v12, 8.507059e+37  ;;  %v1143_v62 = vand.u32 2147483648, %v3145_v20 }
 0x292   :  { %v940_v31 = vadd.f32 %v3127_v38, %v939_v41  ;;  %v3204_v27 = vpop.eup %2195  ;;  %1672 = vmatpush.msra.mxu3 %v1270_v0  ;;  %v930_v13 = vsel %vm929_vm6, %v3084_v37, %v926_v11  ;;  %v1129_v26 = vand.u32 2147483648, %v3147_v18  ;;  %vm1109_vm10 = vweird.f32 %v3082_v25 }
 0x293   :  { %v3193_v40 = vpop.xlane.xlu2 %782  ;;  %v1394_v24 = vpop.f32.mrf.mxu3  ;;  %v958_v32 = vsel %vm3197_vm14, %v3123_v8, %v954_v35  ;;  %v1133_v7 = vmul.f32 %v3204_v27, %v3145_v20  ;;  %v948_v8 = vor.u32 1.1754944e-38, %v947_v33  ;;  %vm1138_vm7 = vweird.f32 %v3204_v27 }
 0x294   :  { %v3211_v43 = vpop.eup %2197  ;;  %2199 = vrcp.f32 %v3193_v40  ;;  %v963_v4 = vsel %vm960_vm1, %v962_v55, %v958_v32  ;;  %v944_v21 = vsel %vm3225_vm2, %v3127_v38, %v940_v31  ;;  %2062 = vmatmul.msk.f32.vlgmr.msra.gmra.mxu3 %vm82_vm0, %v1394_v24  ;;  %v935_v61 = vsel %vm3245_vm5, %v3129_v50, %v930_v13  ;;  %vm3284_vm9 = vmor %vm1137_vm3, %vm1138_vm7 }
 0x295   :  { %v3216_v22 = vpop.xlane.xlu0 %786  ;;  %v3218_v58 = vpop.xlane.xlu1 %784  ;;  %v1119_v9 = vmul.f32 %v3211_v43, %v3147_v18  ;;  %v1134_v23 = vsub.f32 1.0, %v1133_v7  ;;  %v1268_v49 = vmul.f32 %v963_v4, %v2474_v54  ;;  %v949_v5 = vsel %vm946_vm4, %v948_v8, %v944_v21 }
 0x296   :  { %2201 = vrcp.f32 %v3216_v22  ;;  %v1267_v29 = vmul.f32 %v949_v5, %v2465_v51  ;;  %v1101_v36 = vand.u32 2147483648, %v3216_v22  ;;  %v1085_v37 = vand.u32 2147483647, %v3218_v58 }
 0x297   :  { %2203 = vrcp.f32 %v3218_v58  ;;  %v1135_v6 = vmul.f32 %v3204_v27, %v1134_v23  ;;  %v1120_v38 = vsub.f32 1.0, %v1119_v9  ;;  %1629 = vmatpush.msra.mxu2 %v1268_v49  ;;  %v1073_v42 = vand.u32 2147483648, %v3193_v40 }
 0x298   :  { %v1087_v52 = vand.u32 2147483648, %v3218_v58  ;;  %v1266_v46 = vmul.f32 %v935_v61, %v2456_v48  ;;  %v1144_v33 = vor.u32 1.1754944e-38, %v1143_v62  ;;  %vm1123_vm11 = vweird.f32 %v3147_v18 }
 0x299   :  { %v1136_v54 = vadd.f32 %v3204_v27, %v1135_v6  ;;  %v1121_v50 = vmul.f32 %v3211_v43, %v1120_v38  ;;  %1630 = vmatpush.msra.mxu2 %v1267_v29  ;;  %v1130_v28 = vor.u32 1.1754944e-38, %v1129_v26  ;;  %v3309_v35 = vor.u32 1.1754944e-38, %v1101_v36 }
 0x29a   :  { %v3262_v59 = vpop.eup %2199  ;;  %vm1081_vm12 = vweird.f32 %v3218_v58  ;;  %vm1124_vm13 = vweird.f32 %v3211_v43  ;;  %v1088_v30 = vor.u32 1.1754944e-38, %v1087_v52  ;;  %v3314_v31 = vor.u32 1.1754944e-38, %v1073_v42 }
 0x29b   :  { %v3267_v1 = vpop.xlane.xlu2 %808  ;;  %v1397_v53 = vpop.f32.mrf.mxu3  ;;  %v1063_v45 = vmul.f32 %v3262_v59, %v3193_v40  ;;  %v1140_v10 = vsel %vm3284_vm9, %v3204_v27, %v1136_v54  ;;  %1631 = vmatpush.msra.mxu2 %v1266_v46  ;;  %vm3322_vm14 = vcmp.eq.f32.partialorder %v1085_v37, 8.507059e+37  ;;  %v1122_v7 = vadd.f32 %v3211_v43, %v1121_v50  ;;  %vm3337_vm2 = vmor %vm1123_vm11, %vm1124_vm13 }
 0x29c   :  { %v3272_v17 = vpop.eup %2201  ;;  %v1365_v3 = vpop.f32.mrf.mxu2  ;;  %2205 = vrcp.f32 %v3267_v1  ;;  %2063 = vmatmul.msk.f32.gmra.mxu3 %vm82_vm0, %v1397_v53  ;;  %v1253_v14 = vand.u32 2147483647, %v3267_v1  ;;  %v1145_v27 = vsel %vm3256_vm8, %v1144_v33, %v1140_v10  ;;  %vm1095_vm15 = vweird.f32 %v3216_v22 }
 0x29d   :  { %v3278_v15 = vpop.eup %2203  ;;  %v1091_v34 = vmul.f32 %v3272_v17, %v3216_v22  ;;  %v3292_v56 = vpop.xlane.xlu0 %780  ;;  %2058 = vmatmul.msk.f32.vlgmr.msra.gmra.mxu2 %vm82_vm0, %v1365_v3  ;;  %v1064_v32 = vsub.f32 1.0, %v1063_v45  ;;  %v1281_v11 = vmul.f32 %v1145_v27, %v2452_v47  ;;  %v1127_v47 = vand.u32 2147483647, %v3147_v18 }
 0x29e   :  { %v3294_v41 = vpop.xlane.xlu1 %778  ;;  %v1077_v20 = vmul.f32 %v3278_v15, %v3218_v58  ;;  %2207 = vrcp.f32 %v3292_v56  ;;  %vm1082_vm1 = vweird.f32 %v3278_v15  ;;  %v1059_v12 = vand.u32 2147483648, %v3292_v56 }
 0x29f   :  { %2209 = vrcp.f32 %v3294_v41  ;;  %v1092_v48 = vsub.f32 1.0, %v1091_v34  ;;  %vm1067_vm3 = vweird.f32 %v3193_v40  ;;  %1751 = vmatpush.msrb.mxu3 %v1281_v11  ;;  %v1126_v23 = vsel %vm3337_vm2, %v3211_v43, %v1122_v7  ;;  %vm1083_vm8 = vmor %vm1081_vm12, %vm1082_vm1 }
 0x2a0   :  { %v1078_v55 = vsub.f32 1.0, %v1077_v20  ;;  %v1108_v38 = vadd.f32 %v3140_v2, %v3240_v16  ;;  %vm1128_vm4 = vcmp.eq.f32.partialorder %v1127_v47, 8.507059e+37  ;;  %vm1110_vm5 = vweird.f32 %v3140_v2 }
 0x2a1   :  { %v1093_v21 = vmul.f32 %v3272_v17, %v1092_v48  ;;  %v1131_v13 = vsel %vm1128_vm4, %v1130_v28, %v1126_v23  ;;  %v1113_v16 = vand.u32 2147483647, %v3082_v25  ;;  %v1065_v54 = vmul.f32 %v3262_v59, %v1064_v32  ;;  %vm1111_vm7 = vmor %vm1109_vm10, %vm1110_vm5 }
 0x2a2   :  { %v3319_v63 = vpop.eup %2205  ;;  %v1079_v0 = vmul.f32 %v3278_v15, %v1078_v55  ;;  %v1045_v26 = vand.u32 2147483648, %v3294_v41  ;;  %v1255_v29 = vand.u32 2147483648, %v3267_v1  ;;  %v1280_v61 = vmul.f32 %v1131_v13, %v2443_v44 }
 0x2a3   :  { %v1245_v60 = vmul.f32 %v3319_v63, %v3267_v1  ;;  %v3372_v36 = vor.u32 1.1754944e-38, %v1059_v12  ;;  %vm1250_vm6 = vweird.f32 %v3319_v63  ;;  %v1094_v37 = vadd.f32 %v3272_v17, %v1093_v21 }
 0x2a4   :  { %v3342_v4 = vpop.eup %2207  ;;  %v1080_v8 = vadd.f32 %v3278_v15, %v1079_v0  ;;  %v1368_v57 = vpop.f32.mrf.mxu2  ;;  %1752 = vmatpush.msrb.mxu3 %v1280_v61  ;;  %v1112_v53 = vsel %vm1111_vm7, %v3140_v2, %v1108_v38  ;;  %vm1249_vm9 = vweird.f32 %v3267_v1  ;;  %vm1114_vm10 = vcmp.eq.f32.partialorder %v1113_v16, 8.507059e+37 }
 0x2a5   :  { %v1400_v6 = vpop.f32.mrf.mxu3  ;;  %v3352_v49 = vpop.eup %2209  ;;  %v1049_v18 = vmul.f32 %v3342_v4, %v3292_v56  ;;  %v1246_v5 = vsub.f32 1.0, %v1245_v60  ;;  %2059 = vmatmul.msk.f32.gmra.mxu2 %vm82_vm0, %v1368_v57  ;;  %v1117_v58 = vsel %vm1114_vm10, %v3235_v19, %v1112_v53  ;;  %vm1096_vm11 = vweird.f32 %v3272_v17  ;;  %v3723_v19 = vld [vmem:[#allocation8_spill] sm:$0xff]  ;;  %v3728_v60 = vld [vmem:[#allocation9_spill] sm:$0xff]  ;;  %v3729_v57 = vld [vmem:[#allocation7_spill] sm:$0xff] }
 0x2a6   :  { %v3356_v39 = vpop.xlane.xlu0 %806  ;;  %v3358_v62 = vpop.xlane.xlu1 %804  ;;  %v3363_v43 = vmul.f32 %v3352_v49, %v3294_v41  ;;  %2064 = vmatmul.msk.f32.gmra.mxu3 %vm82_vm0, %v1400_v6  ;;  %v1084_v50 = vsel %vm1083_vm8, %v3278_v15, %v1080_v8  ;;  %v1099_v52 = vand.u32 2147483647, %v3216_v22  ;;  %vm1053_vm12 = vweird.f32 %v3292_v56  ;;  %v3722_v15 = vld [vmem:[#allocation10_spill] sm:$0xff]  ;;  %vm3463_vm5 = vmor %vm1249_vm9, %vm1250_vm6 }
 0x2a7   :  { %2211 = vrcp.f32 %v3356_v39  ;;  %v1050_v44 = vsub.f32 1.0, %v1049_v18  ;;  %v1247_v42 = vmul.f32 %v3319_v63, %v1246_v5  ;;  %v1241_v3 = vand.u32 2147483648, %v3356_v39 }
 0x2a8   :  { %2213 = vrcp.f32 %v3358_v62  ;;  %v1036_v25 = vsub.f32 1.0, %v3363_v43  ;;  %v1227_v51 = vand.u32 2147483648, %v3358_v62  ;;  %v1089_v34 = vsel %vm3322_vm14, %v1088_v30, %v1084_v50  ;;  %vm3409_vm14 = vmor %vm1095_vm15, %vm1096_vm11 }
 0x2a9   :  { %vm3401_vm13 = vcmp.eq.f32.partialorder %v1253_v14, 8.507059e+37  ;;  %v1279_v45 = vmul.f32 %v1117_v58, %v3722_v15  ;;  %v1277_v10 = vmul.f32 %v1089_v34, %v3723_v19  ;;  %v1066_v28 = vadd.f32 %v3262_v59, %v1065_v54  ;;  %v3732_v58 = vld [vmem:[#allocation18_spill] sm:$0xff] }
 0x2aa   :  { %vm1068_vm1 = vweird.f32 %v3262_v59  ;;  %v1098_v14 = vsel %vm3409_vm14, %v3272_v17, %v1094_v37  ;;  %vm1100_vm2 = vcmp.eq.f32.partialorder %v1099_v52, 8.507059e+37  ;;  %v1071_v27 = vand.u32 2147483647, %v3193_v40 }
 0x2ab   :  { %v3396_v46 = vpop.xlane.xlu2 %802  ;;  %vm3422_vm15 = vmor %vm1067_vm3, %vm1068_vm1  ;;  %v1051_v11 = vmul.f32 %v3342_v4, %v1050_v44  ;;  %vm1039_vm4 = vweird.f32 %v3294_v41  ;;  %1753 = vmatpush.msrb.mxu3 %v1279_v45  ;;  %1710 = vmatpush.msrb.mxu2 %v1277_v10  ;;  %v1103_v17 = vsel %vm1100_vm2, %v3309_v35, %v1098_v14  ;;  %v1248_v47 = vadd.f32 %v3319_v63, %v1247_v42  ;;  %v3735_v10 = vld [vmem:[#allocation6_spill] sm:$0xff] }
 0x2ac   :  { %v1371_v48 = vpop.f32.mrf.mxu2  ;;  %v1070_v7 = vsel %vm3422_vm15, %v3262_v59, %v1066_v28  ;;  %v1278_v9 = vmul.f32 %v1103_v17, %v3728_v60  ;;  %vm1072_vm3 = vcmp.eq.f32.partialorder %v1071_v27, 8.507059e+37  ;;  %v1037_v59 = vmul.f32 %v3352_v49, %v1036_v25  ;;  %v3738_v17 = vld [vmem:[#allocation5_spill] sm:$0xff] }
 0x2ad   :  { %v3398_v2 = vpop.eup %2211  ;;  %v1403_v55 = vpop.f32.mrf.mxu3  ;;  %v1075_v21 = vsel %vm1072_vm3, %v3314_v31, %v1070_v7  ;;  %2060 = vmatmul.msk.f32.gmra.mxu2 %vm82_vm0, %v1371_v48  ;;  %v3450_v8 = vor.u32 1.1754944e-38, %v1045_v26  ;;  %v1256_v23 = vor.u32 1.1754944e-38, %v1255_v29  ;;  %v3454_v18 = vor.u32 1.1754944e-38, %v1241_v3 }
 0x2ae   :  { %v1231_v30 = vmul.f32 %v3398_v2, %v3356_v39  ;;  %v3427_v0 = vpop.xlane.xlu1 %798  ;;  %v3429_v24 = vpop.xlane.xlu0 %800  ;;  %2065 = vmatmul.msk.f32.gmra.mxu3 %vm82_vm0, %v1403_v55  ;;  %v1276_v6 = vmul.f32 %v1075_v21, %v3729_v57  ;;  %v3456_v5 = vor.u32 1.1754944e-38, %v1227_v51  ;;  %v1052_v54 = vadd.f32 %v3342_v4, %v1051_v11  ;;  %v3749_v55 = vld [vmem:[#allocation13_spill] sm:$0xff] }
 0x2af   :  { %v3431_v32 = vpop.eup %2213  ;;  %2215 = vrcp.f32 %v3427_v0  ;;  %v1185_v35 = vand.u32 2147483648, %v3427_v0  ;;  %1754 = vmatpush.msrb.mxu3 %v1278_v9  ;;  %v1197_v16 = vand.u32 2147483647, %v3429_v24  ;;  %vm1235_vm7 = vweird.f32 %v3356_v39 }
 0x2b0   :  { %v1232_v40 = vsub.f32 1.0, %v1231_v30  ;;  %v1217_v12 = vmul.f32 %v3431_v32, %v3358_v62  ;;  %2217 = vrcp.f32 %v3429_v24  ;;  %1711 = vmatpush.msrb.mxu2 %v1276_v6  ;;  %v1199_v29 = vand.u32 2147483648, %v3429_v24 }
 0x2b1   :  { %2219 = vrcp.f32 %v3396_v46  ;;  %v3467_v13 = vor.u32 1.1754944e-38, %v1185_v35  ;;  %vm1054_vm8 = vweird.f32 %v3342_v4  ;;  %v1057_v1 = vand.u32 2147483647, %v3292_v56 }
 0x2b2   :  { %v1233_v38 = vmul.f32 %v3398_v2, %v1232_v40  ;;  %v1218_v43 = vsub.f32 1.0, %v1217_v12  ;;  %v1252_v61 = vsel %vm3463_vm5, %v3319_v63, %v1248_v47  ;;  %vm1193_vm6 = vweird.f32 %v3429_v24  ;;  %vm1055_vm9 = vmor %vm1053_vm12, %vm1054_vm8 }
 0x2b3   :  { %v1213_v3 = vand.u32 2147483648, %v3396_v46  ;;  %v1257_v53 = vsel %vm3401_vm13, %v1256_v23, %v1252_v61  ;;  %v1038_v25 = vadd.f32 %v3352_v49, %v1037_v59  ;;  %vm1221_vm10 = vweird.f32 %v3358_v62  ;;  %v3743_v61 = vld [vmem:[#allocation17_spill] sm:$0xff] }
 0x2b4   :  { %v1374_v37 = vpop.f32.mrf.mxu2  ;;  %v1056_v50 = vsel %vm1055_vm9, %v3342_v4, %v1052_v54  ;;  %vm1058_vm11 = vcmp.eq.f32.partialorder %v1057_v1, 8.507059e+37  ;;  %v1289_v34 = vmul.f32 %v1257_v53, %v3732_v58  ;;  %vm1040_vm14 = vweird.f32 %v3352_v49  ;;  %v3507_v4 = vpop.xlane.xlu2 %796  ;;  %v3745_v53 = vld [vmem:[#allocation14_spill] sm:$0xff] }
 0x2b5   :  { %v3471_v26 = vpop.eup %2215  ;;  %v1452_v44 = vpop.f32.mrf.mxu3  ;;  %v1219_v56 = vmul.f32 %v3431_v32, %v1218_v43  ;;  %v1061_v15 = vsel %vm1058_vm11, %v3372_v36, %v1056_v50  ;;  %vm3503_vm12 = vmor %vm1039_vm4, %vm1040_vm14  ;;  %v1043_v36 = vand.u32 2147483647, %v3294_v41  ;;  %2061 = vmatmul.msk.f32.gmra.mxu2 %vm82_vm0, %v1374_v37  ;;  %vm3519_vm13 = vcmp.eq.f32.partialorder %v1197_v16, 8.507059e+37 }
 0x2b6   :  { %v1175_v42 = vmul.f32 %v3471_v26, %v3427_v0  ;;  %v3489_v51 = vpop.xlane.xlu0 %794  ;;  %v3491_v63 = vpop.eup %2217  ;;  %2070 = vmatmul.msk.f32.vlgmr.msrb.gmra.mxu3 %vm82_vm0, %v1452_v44  ;;  %v1275_v33 = vmul.f32 %v1061_v15, %v3735_v10  ;;  %v1042_v28 = vsel %vm3503_vm12, %v3352_v49, %v1038_v25  ;;  %v1200_v30 = vor.u32 1.1754944e-38, %v1199_v29 }
 0x2b7   :  { %v1189_v20 = vmul.f32 %v3491_v63, %v3429_v24  ;;  %v3510_v19 = vpop.eup %2219  ;;  %1833 = vmatpush.msra.mxu3 %v1289_v34  ;;  %2221 = vrcp.f32 %v3489_v51  ;;  %vm1194_vm1 = vweird.f32 %v3491_v63  ;;  %vm1207_vm2 = vweird.f32 %v3396_v46 }
 0x2b8   :  { %v1176_v52 = vsub.f32 1.0, %v1175_v42  ;;  %v1203_v14 = vmul.f32 %v3510_v19, %v3396_v46  ;;  %v3527_v49 = vor.u32 1.1754944e-38, %v1213_v3  ;;  %1712 = vmatpush.msrb.mxu2 %v1275_v33  ;;  %vm1044_vm15 = vcmp.eq.f32.partialorder %v1043_v36, 8.507059e+37  ;;  %vm3554_vm8 = vmor %vm1193_vm6, %vm1194_vm1  ;;  %v3744_v42 = vld [vmem:[#allocation16_spill] sm:$0xff] }
 0x2b9   :  { %v1190_v48 = vsub.f32 1.0, %v1189_v20  ;;  %2223 = vrcp.f32 %v3507_v4  ;;  %vm1179_vm4 = vweird.f32 %v3427_v0  ;;  %v1047_v11 = vsel %vm1044_vm15, %v3450_v8, %v1042_v28 }
 0x2ba   :  { %v1177_v41 = vmul.f32 %v3471_v26, %v1176_v52  ;;  %v1204_v27 = vsub.f32 1.0, %v1203_v14  ;;  %v1274_v7 = vmul.f32 %v1047_v11, %v3738_v17  ;;  %v1157_v40 = vand.u32 2147483648, %v3489_v51  ;;  %v3751_v11 = vld [vmem:[#allocation11_spill] sm:$0xff] }
 0x2bb   :  { %v1191_v22 = vmul.f32 %v3491_v63, %v1190_v48  ;;  %v1234_v12 = vadd.f32 %v3398_v2, %v1233_v38  ;;  %vm1236_vm3 = vweird.f32 %v3398_v2  ;;  %v1171_v35 = vand.u32 2147483648, %v3507_v4 }
 0x2bc   :  { %v1423_v60 = vpop.f32.mrf.mxu2  ;;  %v1205_v21 = vmul.f32 %v3510_v19, %v1204_v27  ;;  %vm3543_vm5 = vmor %vm1235_vm7, %vm1236_vm3  ;;  %v1239_v8 = vand.u32 2147483647, %v3356_v39  ;;  %1713 = vmatpush.msrb.mxu2 %v1274_v7  ;;  %vm1151_vm9 = vweird.f32 %v3489_v51  ;;  %v1220_v38 = vadd.f32 %v3431_v32, %v1219_v56 }
 0x2bd   :  { %v1455_v9 = vpop.f32.mrf.mxu3  ;;  %v1192_v47 = vadd.f32 %v3491_v63, %v1191_v22  ;;  %v3548_v23 = vpop.eup %2221  ;;  %v1238_v6 = vsel %vm3543_vm5, %v3398_v2, %v1234_v12  ;;  %vm1222_vm7 = vweird.f32 %v3431_v32  ;;  %v1225_v39 = vand.u32 2147483647, %v3358_v62  ;;  %2066 = vmatmul.msk.f32.vlgmr.msrb.gmra.mxu2 %vm82_vm0, %v1423_v60 }
 0x2be   :  { %v1147_v24 = vmul.f32 %v3548_v23, %v3489_v51  ;;  %vm1240_vm6 = vcmp.eq.f32.partialorder %v1239_v8, 8.507059e+37  ;;  %vm1223_vm11 = vmor %vm1221_vm10, %vm1222_vm7  ;;  %2071 = vmatmul.msk.f32.gmra.mxu3 %vm82_vm0, %v1455_v9  ;;  %v1206_v2 = vadd.f32 %v3510_v19, %v1205_v21  ;;  %vm1208_vm10 = vweird.f32 %v3510_v19 }
 0x2bf   :  { %v1196_v31 = vsel %vm3554_vm8, %v3491_v63, %v1192_v47  ;;  %v2224_v43 = vpop.eup %2223  ;;  %v1243_v16 = vsel %vm1240_vm6, %v3454_v18, %v1238_v6  ;;  %v1224_v54 = vsel %vm1223_vm11, %v3431_v32, %v1220_v38  ;;  %vm1226_vm14 = vcmp.eq.f32.partialorder %v1225_v39, 8.507059e+37  ;;  %vm1209_vm12 = vmor %vm1207_vm2, %vm1208_vm10 }
 0x2c0   :  { %v1201_v62 = vsel %vm3519_vm13, %v1200_v30, %v1196_v31  ;;  %v1148_v29 = vsub.f32 1.0, %v1147_v24  ;;  %v1161_v1 = vmul.f32 %v2224_v43, %v3507_v4  ;;  %v1288_v37 = vmul.f32 %v1243_v16, %v3743_v61 }
 0x2c1   :  { %v1229_v44 = vsel %vm1226_vm14, %v3456_v5, %v1224_v54  ;;  %v1285_v25 = vmul.f32 %v1201_v62, %v3745_v53  ;;  %v1211_v32 = vand.u32 2147483647, %v3396_v46  ;;  %v1178_v50 = vadd.f32 %v3471_v26, %v1177_v41  ;;  %v3750_v41 = vld [vmem:[#allocation12_spill] sm:$0xff] }
 0x2c2   :  { %v1287_v3 = vmul.f32 %v1229_v44, %v3744_v42  ;;  %v1149_v18 = vmul.f32 %v3548_v23, %v1148_v29  ;;  %v1162_v63 = vsub.f32 1.0, %v1161_v1  ;;  %1834 = vmatpush.msra.mxu3 %v1288_v37  ;;  %vm1180_vm13 = vweird.f32 %v3471_v26 }
 0x2c3   :  { %1792 = vmatpush.msra.mxu2 %v1285_v25  ;;  %v1210_v5 = vsel %vm1209_vm12, %v3510_v19, %v1206_v2  ;;  %vm1212_vm1 = vcmp.eq.f32.partialorder %v1211_v32, 8.507059e+37  ;;  %vm3594_vm15 = vmor %vm1179_vm4, %vm1180_vm13  ;;  %v1183_v34 = vand.u32 2147483647, %v3427_v0  ;;  %vm1166_vm3 = vweird.f32 %v2224_v43  ;;  %v3748_v19 = vld [vmem:[#allocation15_spill] sm:$0xff] }
 0x2c4   :  { %v1426_v56 = vpop.f32.mrf.mxu2  ;;  %v1163_v46 = vmul.f32 %v2224_v43, %v1162_v63  ;;  %1835 = vmatpush.msra.mxu3 %v1287_v3  ;;  %v1215_v20 = vsel %vm1212_vm1, %v3527_v49, %v1210_v5  ;;  %v1182_v15 = vsel %vm3594_vm15, %v3471_v26, %v1178_v50  ;;  %v1169_v45 = vand.u32 2147483647, %v3507_v4 }
 0x2c5   :  { %v1458_v52 = vpop.f32.mrf.mxu3  ;;  %v1286_v10 = vmul.f32 %v1215_v20, %v3748_v19  ;;  %vm1184_vm2 = vcmp.eq.f32.partialorder %v1183_v34, 8.507059e+37  ;;  %v1150_v33 = vadd.f32 %v3548_v23, %v1149_v18  ;;  %vm1152_vm4 = vweird.f32 %v3548_v23  ;;  %2067 = vmatmul.msk.f32.gmra.mxu2 %vm82_vm0, %v1426_v56  ;;  %v75_v20 = vld [vmem:[%s3661_s2 + $0x8] sm:$0xff] }
 0x2c6   :  { %vm1165_vm5 = vweird.f32 %v3507_v4  ;;  %v1187_v0 = vsel %vm1184_vm2, %v3467_v13, %v1182_v15  ;;  %2072 = vmatmul.msk.f32.gmra.mxu3 %vm82_vm0, %v1458_v52  ;;  %v1164_v28 = vadd.f32 %v2224_v43, %v1163_v46  ;;  %vm1153_vm8 = vmor %vm1151_vm9, %vm1152_vm4  ;;  %v1155_v26 = vand.u32 2147483647, %v3489_v51  ;;  %v74_v52 = vld [vmem:[%s3661_s2] sm:$0xff] }
 0x2c7   :  { %v1158_v36 = vor.u32 1.1754944e-38, %v1157_v40  ;;  %v1172_v48 = vor.u32 1.1754944e-38, %v1171_v35  ;;  %1836 = vmatpush.msra.mxu3 %v1286_v10  ;;  %v1284_v30 = vmul.f32 %v1187_v0, %v3749_v55  ;;  %vm1167_vm7 = vmor %vm1165_vm5, %vm1166_vm3  ;;  %v1154_v13 = vsel %vm1153_vm8, %v3548_v23, %v1150_v33  ;;  %v77_v10 = vld [vmem:[%s3661_s2 + $0x18] sm:$0xff]  ;;  %v78_v33 = vld [vmem:[%s3662_s3] sm:$0xff] }
 0x2c8   :  { %v1168_v4 = vsel %vm1167_vm7, %v2224_v43, %v1164_v28  ;;  %vm1170_vm6 = vcmp.eq.f32.partialorder %v1169_v45, 8.507059e+37  ;;  %vm1156_vm11 = vcmp.eq.f32.partialorder %v1155_v26, 8.507059e+37  ;;  %v76_v45 = vld [vmem:[%s3661_s2 + $0x10] sm:$0xff]  ;;  %v2251_v19 = vmov 0   ;;  %v79_v28 = vld [vmem:[%s3662_s3 + $0x8] sm:$0xff]  ;;  %v81_v26 = vld [vmem:[%s3662_s3 + $0x18] sm:$0xff] }
 0x2c9   :  { %1793 = vmatpush.msra.mxu2 %v1284_v30  ;;  %v1173_v14 = vsel %vm1170_vm6, %v1172_v48, %v1168_v4  ;;  %v1159_v49 = vsel %vm1156_vm11, %v1158_v36, %v1154_v13  ;;  %2094 = vset.pattern.permute.xlu1 %v2251_v19  ;;  %v80_v0 = vld [vmem:[%s3662_s3 + $0x10] sm:$0xff]  ;;  %s2252_s3 = smov [#allocation2]  }
 0x2ca   :  { %v1283_v22 = vmul.f32 %v1173_v14, %v3750_v41  ;;  %v1282_v17 = vmul.f32 %v1159_v49, %v3751_v11  ;;  %2096 = vset.pattern.permute.xlu0 %v2251_v19  ;;  %2095 = vset.pattern.permute.xlu2 %v2251_v19  ;;  %s1940_s7 = sshll.u32 %s2252_s3, 4  ;;  %s1941_s7 = int_to_ptr.vmem [resolvable:$true] %s1940_s7 }
 0x2cb   :  { %1852 = vperm.xlu1 %2094, %v78_v33   ;;  %1862 = vperm.xlu0 %2096, %v80_v0  }
 0x2cc   :  { %v1429_v51 = vpop.f32.mrf.mxu2  ;;  %1794 = vmatpush.msra.mxu2 %v1283_v22  ;;  %1857 = vperm.xlu2 %2095, %v79_v28  }
 0x2cd   :  { %v1461_v27 = vpop.f32.mrf.mxu3  ;;  %2068 = vmatmul.msk.f32.gmra.mxu2 %vm82_vm0, %v1429_v51 }
 0x2ce   :  { %1795 = vmatpush.msra.mxu2 %v1282_v17  ;;  %2073 = vmatmul.msk.f32.gmra.mxu3 %vm82_vm0, %v1461_v27 }
 0x2d4   :  { %v1432_v7 = vpop.f32.mrf.mxu2  ;;  %1867 = vperm.xlu2 %2095, %v81_v26  }
 0x2d5   :  { %v1510_v40 = vpop.f32.mrf.mxu3  ;;  %2069 = vmatmul.msk.f32.gmra.mxu2 %vm82_vm0, %v1432_v7 }
 0x2d6   :  { %2078 = vmatmul.msk.f32.vlgmr.msra.gmra.mxu3 %vm82_vm0, %v1510_v40 }
 0x2dc   :  { %v1481_v12 = vpop.f32.mrf.mxu2 }
 0x2dd   :  { %v1513_v60 = vpop.f32.mrf.mxu3  ;;  %2074 = vmatmul.msk.f32.vlgmr.msra.gmra.mxu2 %vm82_vm0, %v1481_v12 }
 0x2de   :  { %2079 = vmatmul.msk.f32.gmra.mxu3 %vm82_vm0, %v1513_v60 }
 0x2e4   :  { %v1484_v9 = vpop.f32.mrf.mxu2 }
 0x2e5   :  { %v1516_v47 = vpop.f32.mrf.mxu3  ;;  %2075 = vmatmul.msk.f32.gmra.mxu2 %vm82_vm0, %v1484_v9 }
 0x2e6   :  { %2080 = vmatmul.msk.f32.gmra.mxu3 %vm82_vm0, %v1516_v47 }
 0x2ec   :  { %v1487_v21 = vpop.f32.mrf.mxu2 }
 0x2ed   :  { %v1519_v35 = vpop.f32.mrf.mxu3  ;;  %2076 = vmatmul.msk.f32.gmra.mxu2 %vm82_vm0, %v1487_v21 }
 0x2ee   :  { %2081 = vmatmul.msk.f32.gmra.mxu3 %vm82_vm0, %v1519_v35 }
 0x2f4   :  { %v1490_v59 = vpop.f32.mrf.mxu2 }
 0x2f5   :  { %v1592_v8 = vpop.f32.mrf.mxu3  ;;  %2077 = vmatmul.msk.f32.gmra.mxu2 %vm82_vm0, %v1490_v59 }
 0x2fc   :  { %v1551_v57 = vpop.f32.mrf.mxu2 }
 0x2fd   :  { %v1595_v23 = vpop.f32.mrf.mxu3 }
 0x304   :  { %v1554_v38 = vpop.f32.mrf.mxu2 }
 0x305   :  { %v1598_v6 = vpop.f32.mrf.mxu3 }
 0x30c   :  { %v1557_v24 = vpop.f32.mrf.mxu2 }
 0x30d   :  { %v1601_v39 = vpop.f32.mrf.mxu3 }
 0x314   :  { %v1560_v2 = vpop.f32.mrf.mxu2 }
 0x317   :  { %v1674_v31 = vpop.f32.mrf.mxu3 }
 0x31f   :  { %v1677_v43 = vpop.f32.mrf.mxu3 }
 0x320   :  { %v1633_v16 = vpop.f32.mrf.mxu2 }
 0x326   :  { %v1858_v13 = vpop.permute.xlu2 %1857 }
 0x328   :  { %v1636_v62 = vpop.f32.mrf.mxu2 }
 0x329   :  { %v1680_v54 = vpop.f32.mrf.mxu3 }
 0x32e   :  { %v1868_v22 = vpop.permute.xlu2 %1867 }
 0x330   :  { %v1639_v1 = vpop.f32.mrf.mxu2 }
 0x331   :  { %v1683_v29 = vpop.f32.mrf.mxu3 }
 0x332   :  { %1870 = vmatpush.msrb.mxu2 %v1683_v29 }
 0x334   :  { %1871 = vmatpush.msrb.mxu2 %v1680_v54 }
 0x336   :  { %1872 = vmatpush.msrb.mxu2 %v1677_v43 }
 0x338   :  { %1873 = vmatpush.msrb.mxu2 %v1674_v31  ;;  %v1642_v37 = vpop.f32.mrf.mxu2 }
 0x339   :  { %v1756_v61 = vpop.f32.mrf.mxu3 }
 0x33a   :  { %1874 = vmatpush.msrb.mxu2 %v1642_v37 }
 0x33c   :  { %1875 = vmatpush.msrb.mxu2 %v1639_v1 }
 0x33d   :  { %v1853_v48 = vpop.permute.xlu1 %1852  ;;  %v1863_v49 = vpop.permute.xlu0 %1862 }
 0x33e   :  { %1876 = vmatpush.msrb.mxu2 %v1636_v62 }
 0x340   :  { %1877 = vmatpush.msrb.mxu2 %v1633_v16  ;;  %v1715_v42 = vpop.f32.mrf.mxu2 }
 0x341   :  { %v1759_v44 = vpop.f32.mrf.mxu3 }
 0x342   :  { %1878 = vmatpush.msrb.mxu2 %v1601_v39 }
 0x344   :  { %1879 = vmatpush.msrb.mxu2 %v1598_v6 }
 0x346   :  { %1880 = vmatpush.msrb.mxu2 %v1595_v23 }
 0x348   :  { %1881 = vmatpush.msrb.mxu2 %v1592_v8  ;;  %v1718_v53 = vpop.f32.mrf.mxu2 }
 0x349   :  { %v1762_v3 = vpop.f32.mrf.mxu3 }
 0x34a   :  { %1882 = vmatpush.msrb.mxu2 %v1560_v2 }
 0x34c   :  { %1883 = vmatpush.msrb.mxu2 %v1557_v24 }
 0x34e   :  { %1884 = vmatpush.msrb.mxu2 %v1554_v38 }
 0x350   :  { %1885 = vmatpush.msrb.mxu2 %v1551_v57  ;;  %v1721_v32 = vpop.f32.mrf.mxu2 }
 0x351   :  { %v1765_v25 = vpop.f32.mrf.mxu3  ;;  %1886 = vmatmul.f32.vlgmr.msrb.gmra.mxu2 %v74_v52 }
 0x358   :  { %v1724_v63 = vpop.f32.mrf.mxu2 }
 0x359   :  { %v1838_v18 = vpop.f32.mrf.mxu3  ;;  %1889 = vmatmul.f32.gmra.mxu2 %v75_v20 }
 0x360   :  { %v1797_v5 = vpop.f32.mrf.mxu2 }
 0x361   :  { %v1841_v50 = vpop.f32.mrf.mxu3  ;;  %1892 = vmatmul.f32.gmra.mxu2 %v76_v45 }
 0x368   :  { %v1800_v34 = vpop.f32.mrf.mxu2 }
 0x369   :  { %v1844_v58 = vpop.f32.mrf.mxu3  ;;  %1895 = vmatmul.f32.gmra.mxu2 %v77_v10 }
 0x370   :  { %v1803_v46 = vpop.f32.mrf.mxu2 }
 0x371   :  { %v1847_v56 = vpop.f32.mrf.mxu3 }
 0x372   :  { %1899 = vmatpush.msrb.mxu3 %v1847_v56 }
 0x374   :  { %1900 = vmatpush.msrb.mxu3 %v1844_v58 }
 0x376   :  { %1901 = vmatpush.msrb.mxu3 %v1841_v50 }
 0x378   :  { %1902 = vmatpush.msrb.mxu3 %v1838_v18  ;;  %v1806_v15 = vpop.f32.mrf.mxu2 }
 0x37a   :  { %1903 = vmatpush.msrb.mxu3 %v1806_v15 }
 0x37c   :  { %1904 = vmatpush.msrb.mxu3 %v1803_v46 }
 0x37e   :  { %1905 = vmatpush.msrb.mxu3 %v1800_v34 }
 0x380   :  { %1906 = vmatpush.msrb.mxu3 %v1797_v5 }
 0x382   :  { %1907 = vmatpush.msrb.mxu3 %v1765_v25 }
 0x384   :  { %1908 = vmatpush.msrb.mxu3 %v1762_v3 }
 0x386   :  { %1909 = vmatpush.msrb.mxu3 %v1759_v44 }
 0x388   :  { %1910 = vmatpush.msrb.mxu3 %v1756_v61 }
 0x38a   :  { %1911 = vmatpush.msrb.mxu3 %v1724_v63 }
 0x38c   :  { %1912 = vmatpush.msrb.mxu3 %v1721_v32 }
 0x38e   :  { %1913 = vmatpush.msrb.mxu3 %v1718_v53 }
 0x390   :  { %1914 = vmatpush.msrb.mxu3 %v1715_v42 }
 0x391   :  { %1915 = vmatmul.f32.vlgmr.msrb.gmra.mxu3 %v74_v52 }
 0x399   :  { %1918 = vmatmul.f32.gmra.mxu3 %v75_v20 }
 0x3a1   :  { %1921 = vmatmul.f32.gmra.mxu3 %v76_v45 }
 0x3a9   :  { %1924 = vmatmul.f32.gmra.mxu3 %v77_v10 }
 0x3d4   :  { %v1887_v36 = vpop.f32.mrf.mxu2 }
 0x3d5   :  { %v1888_v30 = vadd.f32 %v1887_v36, %v1853_v48 }
 0x3d7   :  { %1928 = vst [vmem:[#allocation2] sm:$0xff] %v1888_v30 }
 0x3dc   :  { %v1890_v55 = vpop.f32.mrf.mxu2 }
 0x3dd   :  { %v1891_v4 = vadd.f32 %v1890_v55, %v1858_v13 }
 0x3df   :  { %1929 = vst [vmem:[#allocation2 + $0x8] sm:$0xff] %v1891_v4 }
 0x3e4   :  { %v1893_v14 = vpop.f32.mrf.mxu2 }
 0x3e5   :  { %v1894_v41 = vadd.f32 %v1893_v14, %v1863_v49 }
 0x3e7   :  { %1930 = vst [vmem:[#allocation2 + $0x10] sm:$0xff] %v1894_v41 }
 0x3ec   :  { %v1896_v51 = vpop.f32.mrf.mxu2 }
 0x3ed   :  { %v1897_v27 = vadd.f32 %v1896_v51, %v1868_v22 }
 0x3ef   :  { %1931 = vst [vmem:[#allocation2 + $0x18] sm:$0xff] %v1897_v27 }
 0x414   :  { %v1916_v11 = vpop.f32.mrf.mxu3 }
 0x415   :  { %v1917_v17 = vadd.f32 %v1916_v11, %v1853_v48 }
 0x417   :  { %1932 = vst [vmem:[#allocation2 + $0x20] sm:$0xff] %v1917_v17 }
 0x41c   :  { %v1919_v7 = vpop.f32.mrf.mxu3 }
 0x41d   :  { %v1920_v40 = vadd.f32 %v1919_v7, %v1858_v13 }
 0x41f   :  { %1933 = vst [vmem:[#allocation2 + $0x28] sm:$0xff] %v1920_v40 }
 0x424   :  { %v1922_v12 = vpop.f32.mrf.mxu3 }
 0x425   :  { %v1923_v60 = vadd.f32 %v1922_v12, %v1863_v49 }
 0x427   :  { %1934 = vst [vmem:[#allocation2 + $0x30] sm:$0xff] %v1923_v60 }
 0x42c   :  { %v1925_v9 = vpop.f32.mrf.mxu3 }
 0x42d   :  { %v1926_v47 = vadd.f32 %v1925_v9, %v1868_v22 }
 0x42f   :  { %1935 = vst [vmem:[#allocation2 + $0x38] sm:$0xff] %v1926_v47 }
 0x430   :  { %1948 = dma.vmem_to_hbm [thread:$0]  %s1941_s7, 1024, %s1943_s9, [#allocation3], %s2253_s10, %s2253_s10, %s2254_s11  }
 0x431   :  { %2249 = dma.done.wait [#allocation3], 1024  }
 0x432   :  { %2250 = vsyncadd [#allocation3], 4294966272 }
 0x433   :  { %1953 = vsyncpa [#allocation3], 1 }

</bundles_post_ra>
